<compile_context>
chip_gen: v6e
topology: v6e:2x2x1
jax: 0.10.0
libtpu: 0.0.40
codegen_flags: <defaults>
</compile_context>

<pallas_src>
import functools

import jax
import jax.numpy as jnp
from jax.experimental import pallas as pl
from jax.experimental.pallas import tpu as pltpu


# ---------------------------------------------------------------------------
# VMEM budgeting
# ---------------------------------------------------------------------------
def _vmem_capacity_bytes():
    try:
        info = pltpu.get_tpu_info()
        cap = getattr(info, "vmem_capacity_bytes", None)
        if cap:
            return int(cap)
    except Exception:
        pass
    return 64 * 1024 * 1024           # conservative fallback (v7x per-TC VMEM)


_VMEM_CAP = _vmem_capacity_bytes()
# Budget for (double-buffered blocks + in-kernel f32 intermediates) per step.
_BLOCK_BUDGET = min(_VMEM_CAP // 3, 24 * 1024 * 1024)
# Scoped VMEM limit: ~48 MiB on v7x (64 MiB physical), 96 MiB on v5e/v6e.
_VMEM_LIMIT = min(_VMEM_CAP * 3 // 4, 96 * 1024 * 1024)


def _compiler_params():
    return pltpu.CompilerParams(
        dimension_semantics=("parallel",),     # batch axis -> megacore/2 TCs
        vmem_limit_bytes=_VMEM_LIMIT,
    )


# ---------------------------------------------------------------------------
# Pallas kernel 1: fused feature_extractor + key_net (two pointwise-conv
# stacks sharing the same input block).  Block layout: (C, TB*HW), lane-dense.
# ---------------------------------------------------------------------------
def _fused_feat_key_kernel(x_ref, wf1_ref, bf1_ref, wf2_ref, bf2_ref,
                           wk1_ref, bk1_ref, wk2_ref, bk2_ref,
                           feat_ref, key_ref):
    x = x_ref[...].astype(jnp.float32)                        # (cin, cols)

    hf = jnp.dot(wf1_ref[...], x, preferred_element_type=jnp.float32) + bf1_ref[...]
    hf = jnp.maximum(hf, 0.0)
    feat = jnp.dot(wf2_ref[...], hf, preferred_element_type=jnp.float32) + bf2_ref[...]
    feat_ref[...] = feat.astype(feat_ref.dtype)

    hk = jnp.dot(wk1_ref[...], x, preferred_element_type=jnp.float32) + bk1_ref[...]
    hk = jnp.maximum(hk, 0.0)
    key = jnp.dot(wk2_ref[...], hk, preferred_element_type=jnp.float32) + bk2_ref[...]
    key_ref[...] = key.astype(key_ref.dtype)


def fused_feature_key(params, x_flat, *, n, hw, act_dtype):
    """x_flat: (Cin, N*HW) f32 -> (features (D, N*HW), key logits (K, N*HW))."""
    cin = x_flat.shape[0]
    wf1, bf1 = params["feat1"]
    wf2, bf2 = params["feat2"]
    wk1, bk1 = params["key1"]
    wk2, bk2 = params["key2"]
    hidden = wf1.shape[0]
    d = wf2.shape[0]
    k = wk2.shape[0]

    act_size = jnp.dtype(act_dtype).itemsize
    # Per-sample bytes: double-buffered in/out blocks + in-kernel f32 temps.
    per_sample = hw * (cin * 4 * 2
                       + (d + k) * act_size * 2
                       + (2 * hidden + d + k) * 4)
    max_tb = pl.cdiv(n, 2) if n >= 2 else n      # >=2 grid steps for 2-TC chips
    tb = max(1, min(n, _BLOCK_BUDGET // max(1, per_sample), max_tb))
    cols = tb * hw                               # ragged tail handled by padding

    feat, key = pl.pallas_call(
        _fused_feat_key_kernel,
        out_shape=(jax.ShapeDtypeStruct((d, n * hw), act_dtype),
                   jax.ShapeDtypeStruct((k, n * hw), act_dtype)),
        grid=(pl.cdiv(n * hw, cols),),
        in_specs=[
            pl.BlockSpec((cin, cols), lambda i: (0, i)),
            pl.BlockSpec((hidden, cin), lambda i: (0, 0)),
            pl.BlockSpec((hidden, 1), lambda i: (0, 0)),
            pl.BlockSpec((d, hidden), lambda i: (0, 0)),
            pl.BlockSpec((d, 1), lambda i: (0, 0)),
            pl.BlockSpec((hidden, cin), lambda i: (0, 0)),
            pl.BlockSpec((hidden, 1), lambda i: (0, 0)),
            pl.BlockSpec((k, hidden), lambda i: (0, 0)),
            pl.BlockSpec((k, 1), lambda i: (0, 0)),
        ],
        out_specs=(pl.BlockSpec((d, cols), lambda i: (0, i)),
                   pl.BlockSpec((k, cols), lambda i: (0, i))),
        compiler_params=_compiler_params(),
    )(x_flat,
      wf1, bf1.reshape(hidden, 1), wf2, bf2.reshape(d, 1),
      wk1, bk1.reshape(hidden, 1), wk2, bk2.reshape(k, 1))
    return feat, key


# ---------------------------------------------------------------------------
# Pallas kernel 2: spatial softmax + keypoint means + gaussian maps (both
# images) + closed-form transport + BOTH refine_net layers, fused.
# One sample per grid step; blocks are (C, HW) slices of the flat layout.
# ---------------------------------------------------------------------------
def _transport_refine_kernel(ys_ref, xs_ref, skey_ref, tkey_ref,
                             sfeat_ref, tfeat_ref,
                             wr1_ref, br1_ref, wr2_ref, br2_ref,
                             out_ref, *, inv_std_sq):
    ys = ys_ref[...]                                          # (1, HW) f32
    xs = xs_ref[...]

    def gaussian_map(logits):                                 # (K, HW) f32
        m = jnp.max(logits, axis=-1, keepdims=True)
        e = jnp.exp(logits - m)
        # No full (K, HW) division: only a per-keypoint (K,1) reciprocal.
        inv_s = 1.0 / jnp.sum(e, axis=-1, keepdims=True)
        mu_y = jnp.sum(e * ys, axis=-1, keepdims=True) * inv_s
        mu_x = jnp.sum(e * xs, axis=-1, keepdims=True) * inv_s
        dist = ((ys - mu_y) ** 2 + (xs - mu_x) ** 2) * inv_std_sq
        return jnp.exp(-dist)

    skp = gaussian_map(skey_ref[...].astype(jnp.float32))
    tkp = gaussian_map(tkey_ref[...].astype(jnp.float32))

    # Closed-form transport:
    #   out = [prod_k (1-s_k)(1-t_k)] * sfeat
    #       + [sum_k t_k * prod_{j>k} (1-s_j)(1-t_j)] * tfeat
    # Coefficient maps stay in f32 (K is small & static -> unrolled).
    kdim, hw = skp.shape
    p_suffix = jnp.ones((1, hw), jnp.float32)
    b_coef = jnp.zeros((1, hw), jnp.float32)
    for kk in range(kdim - 1, -1, -1):
        s = skp[kk:kk + 1, :]
        t = tkp[kk:kk + 1, :]
        b_coef = b_coef + t * p_suffix
        p_suffix = p_suffix * (1.0 - s) * (1.0 - t)

    transported = (p_suffix * sfeat_ref[...].astype(jnp.float32)
                   + b_coef * tfeat_ref[...].astype(jnp.float32))   # (D, HW)

    # refine_net fused in the epilogue: transported never touches HBM.
    h1 = jnp.dot(wr1_ref[...], transported,
                 preferred_element_type=jnp.float32) + br1_ref[...]
    h1 = jnp.maximum(h1, 0.0)
    y = jnp.dot(wr2_ref[...], h1,
                preferred_element_type=jnp.float32) + br2_ref[...]
    out_ref[...] = y.astype(out_ref.dtype)


def transport_refine(params, skey, tkey, sfeat, tfeat, ys, xs,
                     *, n, hw, std, out_dtype):
    k = skey.shape[0]
    d = sfeat.shape[0]
    wr1, br1 = params["ref1"]
    wr2, br2 = params["ref2"]
    hidden = wr1.shape[0]
    cout = wr2.shape[0]

    # TODO(synk): for very large H*W (e.g. 256x256 on v7x) this one-sample-per
    # step kernel would need spatial chunking with a two-pass softmax.
    kern = functools.partial(_transport_refine_kernel,
                             inv_std_sq=(1.0 / std) ** 2)
    out = pl.pallas_call(
        kern,
        out_shape=jax.ShapeDtypeStruct((cout, n * hw), out_dtype),
        grid=(n,),
        in_specs=[
            pl.BlockSpec((1, hw), lambda i: (0, 0)),     # ys (fetched once)
            pl.BlockSpec((1, hw), lambda i: (0, 0)),     # xs
            pl.BlockSpec((k, hw), lambda i: (0, i)),     # source key logits
            pl.BlockSpec((k, hw), lambda i: (0, i)),     # target key logits
            pl.BlockSpec((d, hw), lambda i: (0, i)),     # source features
            pl.BlockSpec((d, hw), lambda i: (0, i)),     # target features
            pl.BlockSpec((hidden, d), lambda i: (0, 0)),
            pl.BlockSpec((hidden, 1), lambda i: (0, 0)),
            pl.BlockSpec((cout, hidden), lambda i: (0, 0)),
            pl.BlockSpec((cout, 1), lambda i: (0, 0)),
        ],
        out_specs=pl.BlockSpec((cout, hw), lambda i: (0, i)),
        compiler_params=_compiler_params(),
    )(ys, xs, skey, tkey, sfeat, tfeat,
      wr1, br1.reshape(hidden, 1), wr2, br2.reshape(cout, 1))
    return out


# ---------------------------------------------------------------------------
# Parameters for the synthetic sub-networks (deterministic init).
# Weights are stored (fan_out, fan_in) so kernels use them without transpose.
# ---------------------------------------------------------------------------
def _init_linear(key, fan_in, fan_out):
    kw, kb = jax.random.split(key)
    scale = 1.0 / jnp.sqrt(float(fan_in))
    w = jax.random.uniform(kw, (fan_out, fan_in), jnp.float32, -scale, scale)
    b = jax.random.uniform(kb, (fan_out,), jnp.float32, -scale, scale)
    return w, b


def init_params(key, c_in=3, hidden=32, d_feat=32, n_keypoints=4):
    ks = jax.random.split(key, 6)
    return {
        "feat1": _init_linear(ks[0], c_in, hidden),
        "feat2": _init_linear(ks[1], hidden, d_feat),
        "key1": _init_linear(ks[2], c_in, hidden),
        "key2": _init_linear(ks[3], hidden, n_keypoints),
        "ref1": _init_linear(ks[4], d_feat, hidden),
        "ref2": _init_linear(ks[5], hidden, c_in),
    }


# ---------------------------------------------------------------------------
# Forward pass
# ---------------------------------------------------------------------------
def transporter_forward(params, source_images, target_images, std=0.1,
                        act_dtype=jnp.bfloat16):
    n, cin, h, w = source_images.shape
    hw = h * w
    # Lane-density assumption for the flat (C, N*HW) blocks.
    assert hw % 128 == 0 or n == 1, "H*W must be a multiple of 128 (or N == 1)"

    # One cheap transpose at entry: (N, C, H, W) -> (C, N*HW).
    def to_flat(x):
        return jnp.transpose(x.reshape(n, cin, hw), (1, 0, 2)).reshape(cin, n * hw)

    src = to_flat(source_images)
    tgt = to_flat(target_images)

    sfeat, skey = fused_feature_key(params, src, n=n, hw=hw, act_dtype=act_dtype)
    tfeat, tkey = fused_feature_key(params, tgt, n=n, hw=hw, act_dtype=act_dtype)

    # Hoisted spatial-softmax coordinate grids (flattened row-major H*W).
    lin_h = jnp.linspace(-1.0, 1.0, h, dtype=jnp.float32)
    lin_w = jnp.linspace(-1.0, 1.0, w, dtype=jnp.float32)
    ys = jnp.broadcast_to(lin_h[:, None], (h, w)).reshape(1, hw)
    xs = jnp.broadcast_to(lin_w[None, :], (h, w)).reshape(1, hw)

    # .detach() on the source branch only affects gradients; forward values
    # are identical, so stop_gradient keeps the semantics.
    # TODO(synk): for training, the pallas_calls would need a custom_vjp.
    out_flat = transport_refine(
        params,
        jax.lax.stop_gradient(skey), tkey,
        jax.lax.stop_gradient(sfeat), tfeat,
        ys, xs, n=n, hw=hw, std=std, out_dtype=source_images.dtype)

    cout = out_flat.shape[0]
    return jnp.transpose(out_flat.reshape(cout, n, hw), (1, 0, 2)).reshape(n, cout, h, w)


# ---------------------------------------------------------------------------
# Pure-JAX reference (mirrors the PyTorch math) for correctness checks.
# `act_dtype` rounds the inter-kernel activations at the same points as the
# Pallas pipeline (features / key logits stored in HBM).
# ---------------------------------------------------------------------------
def _ref_conv1x1(x, w, b, relu):
    y = jnp.einsum("nchw,dc->ndhw", x, w) + b[None, :, None, None]
    return jnp.maximum(y, 0.0) if relu else y


def _ref_spatial_softmax(f):
    n, k, h, w = f.shape
    p = jax.nn.softmax(f.reshape(n, k, h * w), axis=-1)
    return p.reshape(n, k, h, w)


def _ref_gaussian_map(features, std):
    n, k, h, w = features.shape
    s_row = features.sum(-1)                       # (N,K,H)
    s_col = features.sum(-2)                       # (N,K,W)
    lin_h = jnp.linspace(-1.0, 1.0, h)
    lin_w = jnp.linspace(-1.0, 1.0, w)
    mu_y = (s_row * lin_h).sum(-1)[:, :, None, None]
    mu_x = (s_col * lin_w).sum(-1)[:, :, None, None]
    y = lin_h.reshape(1, 1, h, 1)
    x = lin_w.reshape(1, 1, 1, w)
    dist = ((y - mu_y) ** 2 + (x - mu_x) ** 2) * (1.0 / std) ** 2
    return jnp.exp(-dist)


def _ref_transport(skp, tkp, sfeat, tfeat):
    out = sfeat
    for k in range(skp.shape[1]):
        s = skp[:, k:k + 1]
        t = tkp[:, k:k + 1]
        out = (1 - s) * (1 - t) * out + t * tfeat
    return out


def reference_forward(params, source_images, target_images, std=0.1,
                      act_dtype=jnp.float32):
    def round_act(x):                               # simulate HBM storage dtype
        return x.astype(act_dtype).astype(jnp.float32)

    def feat(x):
        return round_act(_ref_conv1x1(_ref_conv1x1(x, *params["feat1"], True),
                                      *params["feat2"], False))

    def keyn(x):
        return round_act(_ref_conv1x1(_ref_conv1x1(x, *params["key1"], True),
                                      *params["key2"], False))

    sfeat, tfeat = feat(source_images), feat(target_images)
    skp = _ref_gaussian_map(_ref_spatial_softmax(keyn(source_images)), std)
    tkp = _ref_gaussian_map(_ref_spatial_softmax(keyn(target_images)), std)
    transported = _ref_transport(skp, tkp, sfeat, tfeat)
    return _ref_conv1x1(_ref_conv1x1(transported, *params["ref1"], True),
                        *params["ref2"], False)


if __name__ == "__main__":
    key = jax.random.PRNGKey(0)
    kp, ksrc, ktgt = jax.random.split(key, 3)
    params = init_params(kp, c_in=3, hidden=32, d_feat=32, n_keypoints=4)

    source_images = jax.random.normal(ksrc, (2, 3, 16, 16), jnp.float32)
    target_images = jax.random.normal(ktgt, (2, 3, 16, 16), jnp.float32)

    # 1) Exact-math check: f32 inter-kernel activations.
    fwd_f32 = jax.jit(functools.partial(transporter_forward, std=0.1,
                                        act_dtype=jnp.float32))
    out_f32 = jax.block_until_ready(fwd_f32(params, source_images, target_images))
    assert out_f32.shape == (2, 3, 16, 16)
    ref_f32 = reference_forward(params, source_images, target_images,
                                std=0.1, act_dtype=jnp.float32)
    err_f32 = float(jnp.max(jnp.abs(out_f32 - ref_f32)))
    assert jnp.allclose(out_f32, ref_f32, atol=1e-3, rtol=1e-3), err_f32

    # 2) Performance config: bf16 inter-kernel activations (reference rounds
    #    at the same points, so residual error is only f32 reduction order).
    fwd_bf16 = jax.jit(functools.partial(transporter_forward, std=0.1,
                                         act_dtype=jnp.bfloat16))
    out_bf16 = jax.block_until_ready(fwd_bf16(params, source_images, target_images))
    ref_bf16 = reference_forward(params, source_images, target_images,
                                 std=0.1, act_dtype=jnp.bfloat16)
    err_bf16 = float(jnp.max(jnp.abs(out_bf16 - ref_bf16)))
    assert jnp.allclose(out_bf16, ref_bf16, atol=3e-2, rtol=3e-2), err_bf16

    print("KERNEL_OK")
</pallas_src>

<mosaic_0001>
module attributes {stable_mosaic.version = 11 : i64} {
  func.func @_fused_feat_key_kernel(%arg0: i32, %arg1: memref<3x256xf32, #tpu.memory_space<vmem>>, %arg2: memref<32x3xf32, #tpu.memory_space<vmem>>, %arg3: memref<32x1xf32, #tpu.memory_space<vmem>>, %arg4: memref<32x32xf32, #tpu.memory_space<vmem>>, %arg5: memref<32x1xf32, #tpu.memory_space<vmem>>, %arg6: memref<32x3xf32, #tpu.memory_space<vmem>>, %arg7: memref<32x1xf32, #tpu.memory_space<vmem>>, %arg8: memref<4x32xf32, #tpu.memory_space<vmem>>, %arg9: memref<4x1xf32, #tpu.memory_space<vmem>>, %arg10: memref<32x256xf32, #tpu.memory_space<vmem>>, %arg11: memref<4x256xf32, #tpu.memory_space<vmem>>) attributes {dimension_semantics = [#tpu.dimension_semantics<parallel>], iteration_bounds = array<i64: 2>, scalar_prefetch = 0 : i64, scratch_operands = 0 : i64, tpu.core_type = #tpu.core_type<tc>, window_params = [{transform_indices = @transform_0, window_bounds = array<i64: 3, 256>}, {pipeline_mode = #tpu.pipeline_mode<synchronous>, transform_indices = @transform_1, window_bounds = array<i64: 32, 3>}, {pipeline_mode = #tpu.pipeline_mode<synchronous>, transform_indices = @transform_2, window_bounds = array<i64: 32, 1>}, {pipeline_mode = #tpu.pipeline_mode<synchronous>, transform_indices = @transform_3, window_bounds = array<i64: 32, 32>}, {pipeline_mode = #tpu.pipeline_mode<synchronous>, transform_indices = @transform_4, window_bounds = array<i64: 32, 1>}, {pipeline_mode = #tpu.pipeline_mode<synchronous>, transform_indices = @transform_5, window_bounds = array<i64: 32, 3>}, {pipeline_mode = #tpu.pipeline_mode<synchronous>, transform_indices = @transform_6, window_bounds = array<i64: 32, 1>}, {pipeline_mode = #tpu.pipeline_mode<synchronous>, transform_indices = @transform_7, window_bounds = array<i64: 4, 32>}, {pipeline_mode = #tpu.pipeline_mode<synchronous>, transform_indices = @transform_8, window_bounds = array<i64: 4, 1>}, {transform_indices = @transform_9, window_bounds = array<i64: 32, 256>}, {transform_indices = @transform_10, window_bounds = array<i64: 4, 256>}]} {
    %c0 = arith.constant 0 : index
    %c0_0 = arith.constant 0 : index
    %0 = vector.load %arg1[%c0, %c0_0] : memref<3x256xf32, #tpu.memory_space<vmem>>, vector<3x256xf32>
    %c0_1 = arith.constant 0 : index
    %c0_2 = arith.constant 0 : index
    %1 = vector.load %arg2[%c0_1, %c0_2] : memref<32x3xf32, #tpu.memory_space<vmem>>, vector<32x3xf32>
    %cst = arith.constant dense<0.000000e+00> : vector<32x256xf32>
    %2 = tpu.matmul %1, %0, %cst {dimension_numbers = #tpu.dot_dimension_numbers<[1], [0], [0], [1], [0, 0, 1, 1], [], []>} : vector<32x3xf32>, vector<3x256xf32>, vector<32x256xf32> -> vector<32x256xf32>
    %c0_3 = arith.constant 0 : index
    %c0_4 = arith.constant 0 : index
    %3 = vector.load %arg3[%c0_3, %c0_4] : memref<32x1xf32, #tpu.memory_space<vmem>>, vector<32x1xf32>
    %4 = vector.broadcast %3 : vector<32x1xf32> to vector<32x256xf32>
    %5 = arith.addf %2, %4 : vector<32x256xf32>
    %cst_5 = arith.constant 0.000000e+00 : f32
    %6 = vector.broadcast %cst_5 : f32 to vector<32x256xf32>
    %7 = arith.maximumf %5, %6 : vector<32x256xf32>
    %c0_6 = arith.constant 0 : index
    %c0_7 = arith.constant 0 : index
    %8 = vector.load %arg4[%c0_6, %c0_7] : memref<32x32xf32, #tpu.memory_space<vmem>>, vector<32x32xf32>
    %cst_8 = arith.constant dense<0.000000e+00> : vector<32x256xf32>
    %9 = tpu.matmul %8, %7, %cst_8 {dimension_numbers = #tpu.dot_dimension_numbers<[1], [0], [0], [1], [0, 0, 1, 1], [], []>} : vector<32x32xf32>, vector<32x256xf32>, vector<32x256xf32> -> vector<32x256xf32>
    %c0_9 = arith.constant 0 : index
    %c0_10 = arith.constant 0 : index
    %10 = vector.load %arg5[%c0_9, %c0_10] : memref<32x1xf32, #tpu.memory_space<vmem>>, vector<32x1xf32>
    %11 = vector.broadcast %10 : vector<32x1xf32> to vector<32x256xf32>
    %12 = arith.addf %9, %11 : vector<32x256xf32>
    %c0_11 = arith.constant 0 : index
    %c0_12 = arith.constant 0 : index
    %13 = vector.load %arg10[%c0_11, %c0_12] : memref<32x256xf32, #tpu.memory_space<vmem>>, vector<32x256xf32>
    tpu.vector_store %arg10[%c0_11, %c0_12], %12 {strides = array<i32>} : memref<32x256xf32, #tpu.memory_space<vmem>>, vector<32x256xf32>,
    %c0_13 = arith.constant 0 : index
    %c0_14 = arith.constant 0 : index
    %14 = vector.load %arg6[%c0_13, %c0_14] : memref<32x3xf32, #tpu.memory_space<vmem>>, vector<32x3xf32>
    %cst_15 = arith.constant dense<0.000000e+00> : vector<32x256xf32>
    %15 = tpu.matmul %14, %0, %cst_15 {dimension_numbers = #tpu.dot_dimension_numbers<[1], [0], [0], [1], [0, 0, 1, 1], [], []>} : vector<32x3xf32>, vector<3x256xf32>, vector<32x256xf32> -> vector<32x256xf32>
    %c0_16 = arith.constant 0 : index
    %c0_17 = arith.constant 0 : index
    %16 = vector.load %arg7[%c0_16, %c0_17] : memref<32x1xf32, #tpu.memory_space<vmem>>, vector<32x1xf32>
    %17 = vector.broadcast %16 : vector<32x1xf32> to vector<32x256xf32>
    %18 = arith.addf %15, %17 : vector<32x256xf32>
    %cst_18 = arith.constant 0.000000e+00 : f32
    %19 = vector.broadcast %cst_18 : f32 to vector<32x256xf32>
    %20 = arith.maximumf %18, %19 : vector<32x256xf32>
    %c0_19 = arith.constant 0 : index
    %c0_20 = arith.constant 0 : index
    %21 = vector.load %arg8[%c0_19, %c0_20] : memref<4x32xf32, #tpu.memory_space<vmem>>, vector<4x32xf32>
    %cst_21 = arith.constant dense<0.000000e+00> : vector<4x256xf32>
    %22 = tpu.matmul %21, %20, %cst_21 {dimension_numbers = #tpu.dot_dimension_numbers<[1], [0], [0], [1], [0, 0, 1, 1], [], []>} : vector<4x32xf32>, vector<32x256xf32>, vector<4x256xf32> -> vector<4x256xf32>
    %c0_22 = arith.constant 0 : index
    %c0_23 = arith.constant 0 : index
    %23 = vector.load %arg9[%c0_22, %c0_23] : memref<4x1xf32, #tpu.memory_space<vmem>>, vector<4x1xf32>
    %24 = vector.broadcast %23 : vector<4x1xf32> to vector<4x256xf32>
    %25 = arith.addf %22, %24 : vector<4x256xf32>
    %c0_24 = arith.constant 0 : index
    %c0_25 = arith.constant 0 : index
    %26 = vector.load %arg11[%c0_24, %c0_25] : memref<4x256xf32, #tpu.memory_space<vmem>>, vector<4x256xf32>
    tpu.vector_store %arg11[%c0_24, %c0_25], %25 {strides = array<i32>} : memref<4x256xf32, #tpu.memory_space<vmem>>, vector<4x256xf32>,
    return
  }
  func.func @transform_0(%arg0: i32) -> (i32, i32) {
    %c0_i32 = arith.constant 0 : i32
    %c0_i32_0 = arith.constant 0 : i32
    return %c0_i32, %arg0 : i32, i32
  }
  func.func @transform_1(%arg0: i32) -> (i32, i32) {
    %c0_i32 = arith.constant 0 : i32
    %c0_i32_0 = arith.constant 0 : i32
    %c0_i32_1 = arith.constant 0 : i32
    return %c0_i32, %c0_i32_0 : i32, i32
  }
  func.func @transform_2(%arg0: i32) -> (i32, i32) {
    %c0_i32 = arith.constant 0 : i32
    %c0_i32_0 = arith.constant 0 : i32
    %c0_i32_1 = arith.constant 0 : i32
    return %c0_i32, %c0_i32_0 : i32, i32
  }
  func.func @transform_3(%arg0: i32) -> (i32, i32) {
    %c0_i32 = arith.constant 0 : i32
    %c0_i32_0 = arith.constant 0 : i32
    %c0_i32_1 = arith.constant 0 : i32
    return %c0_i32, %c0_i32_0 : i32, i32
  }
  func.func @transform_4(%arg0: i32) -> (i32, i32) {
    %c0_i32 = arith.constant 0 : i32
    %c0_i32_0 = arith.constant 0 : i32
    %c0_i32_1 = arith.constant 0 : i32
    return %c0_i32, %c0_i32_0 : i32, i32
  }
  func.func @transform_5(%arg0: i32) -> (i32, i32) {
    %c0_i32 = arith.constant 0 : i32
    %c0_i32_0 = arith.constant 0 : i32
    %c0_i32_1 = arith.constant 0 : i32
    return %c0_i32, %c0_i32_0 : i32, i32
  }
  func.func @transform_6(%arg0: i32) -> (i32, i32) {
    %c0_i32 = arith.constant 0 : i32
    %c0_i32_0 = arith.constant 0 : i32
    %c0_i32_1 = arith.constant 0 : i32
    return %c0_i32, %c0_i32_0 : i32, i32
  }
  func.func @transform_7(%arg0: i32) -> (i32, i32) {
    %c0_i32 = arith.constant 0 : i32
    %c0_i32_0 = arith.constant 0 : i32
    %c0_i32_1 = arith.constant 0 : i32
    return %c0_i32, %c0_i32_0 : i32, i32
  }
  func.func @transform_8(%arg0: i32) -> (i32, i32) {
    %c0_i32 = arith.constant 0 : i32
    %c0_i32_0 = arith.constant 0 : i32
    %c0_i32_1 = arith.constant 0 : i32
    return %c0_i32, %c0_i32_0 : i32, i32
  }
  func.func @transform_9(%arg0: i32) -> (i32, i32) {
    %c0_i32 = arith.constant 0 : i32
    %c0_i32_0 = arith.constant 0 : i32
    return %c0_i32, %arg0 : i32, i32
  }
  func.func @transform_10(%arg0: i32) -> (i32, i32) {
    %c0_i32 = arith.constant 0 : i32
    %c0_i32_0 = arith.constant 0 : i32
    return %c0_i32, %arg0 : i32, i32
  }
}

module attributes {stable_mosaic.version = 11 : i64} {
  func.func @_transport_refine_kernel(%arg0: i32, %arg1: memref<1x256xf32, #tpu.memory_space<vmem>>, %arg2: memref<1x256xf32, #tpu.memory_space<vmem>>, %arg3: memref<4x256xf32, #tpu.memory_space<vmem>>, %arg4: memref<4x256xf32, #tpu.memory_space<vmem>>, %arg5: memref<32x256xf32, #tpu.memory_space<vmem>>, %arg6: memref<32x256xf32, #tpu.memory_space<vmem>>, %arg7: memref<32x32xf32, #tpu.memory_space<vmem>>, %arg8: memref<32x1xf32, #tpu.memory_space<vmem>>, %arg9: memref<3x32xf32, #tpu.memory_space<vmem>>, %arg10: memref<3x1xf32, #tpu.memory_space<vmem>>, %arg11: memref<3x256xf32, #tpu.memory_space<vmem>>) attributes {dimension_semantics = [#tpu.dimension_semantics<parallel>], iteration_bounds = array<i64: 2>, scalar_prefetch = 0 : i64, scratch_operands = 0 : i64, tpu.core_type = #tpu.core_type<tc>, window_params = [{pipeline_mode = #tpu.pipeline_mode<synchronous>, transform_indices = @transform_0, window_bounds = array<i64: 1, 256>}, {pipeline_mode = #tpu.pipeline_mode<synchronous>, transform_indices = @transform_1, window_bounds = array<i64: 1, 256>}, {transform_indices = @transform_2, window_bounds = array<i64: 4, 256>}, {transform_indices = @transform_3, window_bounds = array<i64: 4, 256>}, {transform_indices = @transform_4, window_bounds = array<i64: 32, 256>}, {transform_indices = @transform_5, window_bounds = array<i64: 32, 256>}, {pipeline_mode = #tpu.pipeline_mode<synchronous>, transform_indices = @transform_6, window_bounds = array<i64: 32, 32>}, {pipeline_mode = #tpu.pipeline_mode<synchronous>, transform_indices = @transform_7, window_bounds = array<i64: 32, 1>}, {pipeline_mode = #tpu.pipeline_mode<synchronous>, transform_indices = @transform_8, window_bounds = array<i64: 3, 32>}, {pipeline_mode = #tpu.pipeline_mode<synchronous>, transform_indices = @transform_9, window_bounds = array<i64: 3, 1>}, {transform_indices = @transform_10, window_bounds = array<i64: 3, 256>}]} {
    %c0 = arith.constant 0 : index
    %c0_0 = arith.constant 0 : index
    %0 = vector.load %arg1[%c0, %c0_0] : memref<1x256xf32, #tpu.memory_space<vmem>>, vector<1x256xf32>
    %c0_1 = arith.constant 0 : index
    %c0_2 = arith.constant 0 : index
    %1 = vector.load %arg2[%c0_1, %c0_2] : memref<1x256xf32, #tpu.memory_space<vmem>>, vector<1x256xf32>
    %c0_3 = arith.constant 0 : index
    %c0_4 = arith.constant 0 : index
    %2 = vector.load %arg3[%c0_3, %c0_4] : memref<4x256xf32, #tpu.memory_space<vmem>>, vector<4x256xf32>
    %cst = arith.constant dense<0xFF800000> : vector<4xf32>
    %3 = vector.multi_reduction <maximumf>, %2, %cst [1] : vector<4x256xf32> to vector<4xf32>
    %4 = vector.shape_cast %3 : vector<4xf32> to vector<4x1xf32>
    %5 = vector.broadcast %4 : vector<4x1xf32> to vector<4x256xf32>
    %6 = arith.subf %2, %5 : vector<4x256xf32>
    %7 = math.exp %6 : vector<4x256xf32>
    %cst_5 = arith.constant dense<0.000000e+00> : vector<4xf32>
    %8 = vector.multi_reduction <add>, %7, %cst_5 [1] : vector<4x256xf32> to vector<4xf32>
    %9 = vector.shape_cast %8 : vector<4xf32> to vector<4x1xf32>
    %cst_6 = arith.constant 1.000000e+00 : f32
    %10 = vector.broadcast %cst_6 : f32 to vector<4x1xf32>
    %11 = arith.divf %10, %9 : vector<4x1xf32>
    %12 = vector.broadcast %0 : vector<1x256xf32> to vector<4x256xf32>
    %13 = arith.mulf %7, %12 : vector<4x256xf32>
    %cst_7 = arith.constant dense<0.000000e+00> : vector<4xf32>
    %14 = vector.multi_reduction <add>, %13, %cst_7 [1] : vector<4x256xf32> to vector<4xf32>
    %15 = vector.shape_cast %14 : vector<4xf32> to vector<4x1xf32>
    %16 = arith.mulf %15, %11 : vector<4x1xf32>
    %17 = vector.broadcast %1 : vector<1x256xf32> to vector<4x256xf32>
    %18 = arith.mulf %7, %17 : vector<4x256xf32>
    %cst_8 = arith.constant dense<0.000000e+00> : vector<4xf32>
    %19 = vector.multi_reduction <add>, %18, %cst_8 [1] : vector<4x256xf32> to vector<4xf32>
    %20 = vector.shape_cast %19 : vector<4xf32> to vector<4x1xf32>
    %21 = arith.mulf %20, %11 : vector<4x1xf32>
    %22 = vector.broadcast %0 : vector<1x256xf32> to vector<4x256xf32>
    %23 = vector.broadcast %16 : vector<4x1xf32> to vector<4x256xf32>
    %24 = arith.subf %22, %23 : vector<4x256xf32>
    %25 = arith.mulf %24, %24 : vector<4x256xf32>
    %26 = vector.broadcast %1 : vector<1x256xf32> to vector<4x256xf32>
    %27 = vector.broadcast %21 : vector<4x1xf32> to vector<4x256xf32>
    %28 = arith.subf %26, %27 : vector<4x256xf32>
    %29 = arith.mulf %28, %28 : vector<4x256xf32>
    %30 = arith.addf %25, %29 : vector<4x256xf32>
    %cst_9 = arith.constant 1.000000e+02 : f32
    %31 = vector.broadcast %cst_9 : f32 to vector<4x256xf32>
    %32 = arith.mulf %30, %31 : vector<4x256xf32>
    %cst_10 = arith.constant 0.000000e+00 : f32
    %33 = vector.broadcast %cst_10 : f32 to vector<4x256xf32>
    %34 = arith.subf %33, %32 : vector<4x256xf32>
    %35 = math.exp %34 : vector<4x256xf32>
    %c0_11 = arith.constant 0 : index
    %c0_12 = arith.constant 0 : index
    %36 = vector.load %arg4[%c0_11, %c0_12] : memref<4x256xf32, #tpu.memory_space<vmem>>, vector<4x256xf32>
    %cst_13 = arith.constant dense<0xFF800000> : vector<4xf32>
    %37 = vector.multi_reduction <maximumf>, %36, %cst_13 [1] : vector<4x256xf32> to vector<4xf32>
    %38 = vector.shape_cast %37 : vector<4xf32> to vector<4x1xf32>
    %39 = vector.broadcast %38 : vector<4x1xf32> to vector<4x256xf32>
    %40 = arith.subf %36, %39 : vector<4x256xf32>
    %41 = math.exp %40 : vector<4x256xf32>
    %cst_14 = arith.constant dense<0.000000e+00> : vector<4xf32>
    %42 = vector.multi_reduction <add>, %41, %cst_14 [1] : vector<4x256xf32> to vector<4xf32>
    %43 = vector.shape_cast %42 : vector<4xf32> to vector<4x1xf32>
    %cst_15 = arith.constant 1.000000e+00 : f32
    %44 = vector.broadcast %cst_15 : f32 to vector<4x1xf32>
    %45 = arith.divf %44, %43 : vector<4x1xf32>
    %46 = vector.broadcast %0 : vector<1x256xf32> to vector<4x256xf32>
    %47 = arith.mulf %41, %46 : vector<4x256xf32>
    %cst_16 = arith.constant dense<0.000000e+00> : vector<4xf32>
    %48 = vector.multi_reduction <add>, %47, %cst_16 [1] : vector<4x256xf32> to vector<4xf32>
    %49 = vector.shape_cast %48 : vector<4xf32> to vector<4x1xf32>
    %50 = arith.mulf %49, %45 : vector<4x1xf32>
    %51 = vector.broadcast %1 : vector<1x256xf32> to vector<4x256xf32>
    %52 = arith.mulf %41, %51 : vector<4x256xf32>
    %cst_17 = arith.constant dense<0.000000e+00> : vector<4xf32>
    %53 = vector.multi_reduction <add>, %52, %cst_17 [1] : vector<4x256xf32> to vector<4xf32>
    %54 = vector.shape_cast %53 : vector<4xf32> to vector<4x1xf32>
    %55 = arith.mulf %54, %45 : vector<4x1xf32>
    %56 = vector.broadcast %0 : vector<1x256xf32> to vector<4x256xf32>
    %57 = vector.broadcast %50 : vector<4x1xf32> to vector<4x256xf32>
    %58 = arith.subf %56, %57 : vector<4x256xf32>
    %59 = arith.mulf %58, %58 : vector<4x256xf32>
    %60 = vector.broadcast %1 : vector<1x256xf32> to vector<4x256xf32>
    %61 = vector.broadcast %55 : vector<4x1xf32> to vector<4x256xf32>
    %62 = arith.subf %60, %61 : vector<4x256xf32>
    %63 = arith.mulf %62, %62 : vector<4x256xf32>
    %64 = arith.addf %59, %63 : vector<4x256xf32>
    %cst_18 = arith.constant 1.000000e+02 : f32
    %65 = vector.broadcast %cst_18 : f32 to vector<4x256xf32>
    %66 = arith.mulf %64, %65 : vector<4x256xf32>
    %cst_19 = arith.constant 0.000000e+00 : f32
    %67 = vector.broadcast %cst_19 : f32 to vector<4x256xf32>
    %68 = arith.subf %67, %66 : vector<4x256xf32>
    %69 = math.exp %68 : vector<4x256xf32>
    %cst_20 = arith.constant 1.000000e+00 : f32
    %70 = vector.broadcast %cst_20 : f32 to vector<1x256xf32>
    %cst_21 = arith.constant 0.000000e+00 : f32
    %71 = vector.broadcast %cst_21 : f32 to vector<1x256xf32>
    %72 = vector.extract_strided_slice %35 {offsets = [3, 0], sizes = [1, 256], strides = [1, 1]} : vector<4x256xf32> to vector<1x256xf32>
    %73 = vector.extract_strided_slice %69 {offsets = [3, 0], sizes = [1, 256], strides = [1, 1]} : vector<4x256xf32> to vector<1x256xf32>
    %74 = arith.mulf %73, %70 : vector<1x256xf32>
    %75 = arith.addf %71, %74 : vector<1x256xf32>
    %cst_22 = arith.constant 1.000000e+00 : f32
    %76 = vector.broadcast %cst_22 : f32 to vector<1x256xf32>
    %77 = arith.subf %76, %72 : vector<1x256xf32>
    %78 = arith.mulf %70, %77 : vector<1x256xf32>
    %cst_23 = arith.constant 1.000000e+00 : f32
    %79 = vector.broadcast %cst_23 : f32 to vector<1x256xf32>
    %80 = arith.subf %79, %73 : vector<1x256xf32>
    %81 = arith.mulf %78, %80 : vector<1x256xf32>
    %82 = vector.extract_strided_slice %35 {offsets = [2, 0], sizes = [1, 256], strides = [1, 1]} : vector<4x256xf32> to vector<1x256xf32>
    %83 = vector.extract_strided_slice %69 {offsets = [2, 0], sizes = [1, 256], strides = [1, 1]} : vector<4x256xf32> to vector<1x256xf32>
    %84 = arith.mulf %83, %81 : vector<1x256xf32>
    %85 = arith.addf %75, %84 : vector<1x256xf32>
    %cst_24 = arith.constant 1.000000e+00 : f32
    %86 = vector.broadcast %cst_24 : f32 to vector<1x256xf32>
    %87 = arith.subf %86, %82 : vector<1x256xf32>
    %88 = arith.mulf %81, %87 : vector<1x256xf32>
    %cst_25 = arith.constant 1.000000e+00 : f32
    %89 = vector.broadcast %cst_25 : f32 to vector<1x256xf32>
    %90 = arith.subf %89, %83 : vector<1x256xf32>
    %91 = arith.mulf %88, %90 : vector<1x256xf32>
    %92 = vector.extract_strided_slice %35 {offsets = [1, 0], sizes = [1, 256], strides = [1, 1]} : vector<4x256xf32> to vector<1x256xf32>
    %93 = vector.extract_strided_slice %69 {offsets = [1, 0], sizes = [1, 256], strides = [1, 1]} : vector<4x256xf32> to vector<1x256xf32>
    %94 = arith.mulf %93, %91 : vector<1x256xf32>
    %95 = arith.addf %85, %94 : vector<1x256xf32>
    %cst_26 = arith.constant 1.000000e+00 : f32
    %96 = vector.broadcast %cst_26 : f32 to vector<1x256xf32>
    %97 = arith.subf %96, %92 : vector<1x256xf32>
    %98 = arith.mulf %91, %97 : vector<1x256xf32>
    %cst_27 = arith.constant 1.000000e+00 : f32
    %99 = vector.broadcast %cst_27 : f32 to vector<1x256xf32>
    %100 = arith.subf %99, %93 : vector<1x256xf32>
    %101 = arith.mulf %98, %100 : vector<1x256xf32>
    %102 = vector.extract_strided_slice %35 {offsets = [0, 0], sizes = [1, 256], strides = [1, 1]} : vector<4x256xf32> to vector<1x256xf32>
    %103 = vector.extract_strided_slice %69 {offsets = [0, 0], sizes = [1, 256], strides = [1, 1]} : vector<4x256xf32> to vector<1x256xf32>
    %104 = arith.mulf %103, %101 : vector<1x256xf32>
    %105 = arith.addf %95, %104 : vector<1x256xf32>
    %cst_28 = arith.constant 1.000000e+00 : f32
    %106 = vector.broadcast %cst_28 : f32 to vector<1x256xf32>
    %107 = arith.subf %106, %102 : vector<1x256xf32>
    %108 = arith.mulf %101, %107 : vector<1x256xf32>
    %cst_29 = arith.constant 1.000000e+00 : f32
    %109 = vector.broadcast %cst_29 : f32 to vector<1x256xf32>
    %110 = arith.subf %109, %103 : vector<1x256xf32>
    %111 = arith.mulf %108, %110 : vector<1x256xf32>
    %c0_30 = arith.constant 0 : index
    %c0_31 = arith.constant 0 : index
    %112 = vector.load %arg5[%c0_30, %c0_31] : memref<32x256xf32, #tpu.memory_space<vmem>>, vector<32x256xf32>
    %113 = vector.broadcast %111 : vector<1x256xf32> to vector<32x256xf32>
    %114 = arith.mulf %113, %112 : vector<32x256xf32>
    %c0_32 = arith.constant 0 : index
    %c0_33 = arith.constant 0 : index
    %115 = vector.load %arg6[%c0_32, %c0_33] : memref<32x256xf32, #tpu.memory_space<vmem>>, vector<32x256xf32>
    %116 = vector.broadcast %105 : vector<1x256xf32> to vector<32x256xf32>
    %117 = arith.mulf %116, %115 : vector<32x256xf32>
    %118 = arith.addf %114, %117 : vector<32x256xf32>
    %c0_34 = arith.constant 0 : index
    %c0_35 = arith.constant 0 : index
    %119 = vector.load %arg7[%c0_34, %c0_35] : memref<32x32xf32, #tpu.memory_space<vmem>>, vector<32x32xf32>
    %cst_36 = arith.constant dense<0.000000e+00> : vector<32x256xf32>
    %120 = tpu.matmul %119, %118, %cst_36 {dimension_numbers = #tpu.dot_dimension_numbers<[1], [0], [0], [1], [0, 0, 1, 1], [], []>} : vector<32x32xf32>, vector<32x256xf32>, vector<32x256xf32> -> vector<32x256xf32>
    %c0_37 = arith.constant 0 : index
    %c0_38 = arith.constant 0 : index
    %121 = vector.load %arg8[%c0_37, %c0_38] : memref<32x1xf32, #tpu.memory_space<vmem>>, vector<32x1xf32>
    %122 = vector.broadcast %121 : vector<32x1xf32> to vector<32x256xf32>
    %123 = arith.addf %120, %122 : vector<32x256xf32>
    %cst_39 = arith.constant 0.000000e+00 : f32
    %124 = vector.broadcast %cst_39 : f32 to vector<32x256xf32>
    %125 = arith.maximumf %123, %124 : vector<32x256xf32>
    %c0_40 = arith.constant 0 : index
    %c0_41 = arith.constant 0 : index
    %126 = vector.load %arg9[%c0_40, %c0_41] : memref<3x32xf32, #tpu.memory_space<vmem>>, vector<3x32xf32>
    %cst_42 = arith.constant dense<0.000000e+00> : vector<3x256xf32>
    %127 = tpu.matmul %126, %125, %cst_42 {dimension_numbers = #tpu.dot_dimension_numbers<[1], [0], [0], [1], [0, 0, 1, 1], [], []>} : vector<3x32xf32>, vector<32x256xf32>, vector<3x256xf32> -> vector<3x256xf32>
    %c0_43 = arith.constant 0 : index
    %c0_44 = arith.constant 0 : index
    %128 = vector.load %arg10[%c0_43, %c0_44] : memref<3x1xf32, #tpu.memory_space<vmem>>, vector<3x1xf32>
    %129 = vector.broadcast %128 : vector<3x1xf32> to vector<3x256xf32>
    %130 = arith.addf %127, %129 : vector<3x256xf32>
    %c0_45 = arith.constant 0 : index
    %c0_46 = arith.constant 0 : index
    %131 = vector.load %arg11[%c0_45, %c0_46] : memref<3x256xf32, #tpu.memory_space<vmem>>, vector<3x256xf32>
    tpu.vector_store %arg11[%c0_45, %c0_46], %130 {strides = array<i32>} : memref<3x256xf32, #tpu.memory_space<vmem>>, vector<3x256xf32>,
    return
  }
  func.func @transform_0(%arg0: i32) -> (i32, i32) {
    %c0_i32 = arith.constant 0 : i32
    %c0_i32_0 = arith.constant 0 : i32
    %c0_i32_1 = arith.constant 0 : i32
    return %c0_i32, %c0_i32_0 : i32, i32
  }
  func.func @transform_1(%arg0: i32) -> (i32, i32) {
    %c0_i32 = arith.constant 0 : i32
    %c0_i32_0 = arith.constant 0 : i32
    %c0_i32_1 = arith.constant 0 : i32
    return %c0_i32, %c0_i32_0 : i32, i32
  }
  func.func @transform_2(%arg0: i32) -> (i32, i32) {
    %c0_i32 = arith.constant 0 : i32
    %c0_i32_0 = arith.constant 0 : i32
    return %c0_i32, %arg0 : i32, i32
  }
  func.func @transform_3(%arg0: i32) -> (i32, i32) {
    %c0_i32 = arith.constant 0 : i32
    %c0_i32_0 = arith.constant 0 : i32
    return %c0_i32, %arg0 : i32, i32
  }
  func.func @transform_4(%arg0: i32) -> (i32, i32) {
    %c0_i32 = arith.constant 0 : i32
    %c0_i32_0 = arith.constant 0 : i32
    return %c0_i32, %arg0 : i32, i32
  }
  func.func @transform_5(%arg0: i32) -> (i32, i32) {
    %c0_i32 = arith.constant 0 : i32
    %c0_i32_0 = arith.constant 0 : i32
    return %c0_i32, %arg0 : i32, i32
  }
  func.func @transform_6(%arg0: i32) -> (i32, i32) {
    %c0_i32 = arith.constant 0 : i32
    %c0_i32_0 = arith.constant 0 : i32
    %c0_i32_1 = arith.constant 0 : i32
    return %c0_i32, %c0_i32_0 : i32, i32
  }
  func.func @transform_7(%arg0: i32) -> (i32, i32) {
    %c0_i32 = arith.constant 0 : i32
    %c0_i32_0 = arith.constant 0 : i32
    %c0_i32_1 = arith.constant 0 : i32
    return %c0_i32, %c0_i32_0 : i32, i32
  }
  func.func @transform_8(%arg0: i32) -> (i32, i32) {
    %c0_i32 = arith.constant 0 : i32
    %c0_i32_0 = arith.constant 0 : i32
    %c0_i32_1 = arith.constant 0 : i32
    return %c0_i32, %c0_i32_0 : i32, i32
  }
  func.func @transform_9(%arg0: i32) -> (i32, i32) {
    %c0_i32 = arith.constant 0 : i32
    %c0_i32_0 = arith.constant 0 : i32
    %c0_i32_1 = arith.constant 0 : i32
    return %c0_i32, %c0_i32_0 : i32, i32
  }
  func.func @transform_10(%arg0: i32) -> (i32, i32) {
    %c0_i32 = arith.constant 0 : i32
    %c0_i32_0 = arith.constant 0 : i32
    return %c0_i32, %arg0 : i32, i32
  }
}

</mosaic_0001>

<bundles_post_ra>
// kernel: transporter_forward.5
= control target key start
LH: loop header
LB: loop body
LE: loop exit
PB: predicated region body
PF: predicated region fallthrough
CT: control target
= control target key end

     0   :  { %s1299_s13 = smov 0   ;;  %s1301_s14 = smov 0   ;;  %s1473_s0 = inlined_call_operand.vmem [shape: f32[1,256], index: 0, kind: input, shape index: {}]   ;;  %s1474_s1 = inlined_call_operand.vmem [shape: f32[1,256], index: 1, kind: input, shape index: {}]   ;;  %s1475_s2 = inlined_call_operand.vmem [shape: f32[4,512], index: 2, kind: input, shape index: {}]   ;;  %s1476_s3 = inlined_call_operand.vmem [shape: f32[4,512], index: 3, kind: input, shape index: {}]   ;;  %s1477_s4 = inlined_call_operand.vmem [shape: f32[32,512], index: 4, kind: input, shape index: {}]   ;;  %s1478_s5 = inlined_call_operand.vmem [shape: f32[32,512], index: 5, kind: input, shape index: {}]   ;;  %s1479_s6 = inlined_call_operand.vmem [shape: f32[32,32], index: 6, kind: input, shape index: {}]   ;;  %s1480_s7 = inlined_call_operand.vmem [shape: f32[32,1], index: 7, kind: input, shape index: {}]   ;;  %s1481_s8 = inlined_call_operand.vmem [shape: f32[3,32], index: 8, kind: input, shape index: {}]   ;;  %s1482_s9 = inlined_call_operand.vmem [shape: f32[3,1], index: 9, kind: input, shape index: {}]   ;;  %s1483_s10 = inlined_call_operand.vmem [shape: f32[3,512], index: 10, kind: output, shape index: {}]  }
   0x1   :  { %s1303_s15 = smov 0  }
   0x2 LB: > { %s1142_s16 = sadd.s32 4294967295, %s1239_s15   ;;  %s1316_s17 = sadd.s32 1, %s1239_s15   ;;  %s1239_s15 = sphi %s1303_s15, %s1487_s15   ;;  %s1235_s14 = sphi %s1301_s14, %s1486_s14   ;;  %s1231_s13 = sphi %s1299_s13, %s1485_s13  }
   0x3   : > { %s118_s18 = ssub.s32 %s1239_s15, %s1316_s17  ;;  %s121_s19 = sadd.s32 1, %s1235_s14 }
   0x4   : > { %p119_p0 = scmp.eq.s32.totalorder %s118_s18, 0  ;;  %p128_p1 = scmp.ne.s32.totalorder %s1235_s14, %s1231_s13 }
   0x5   : > { %p129_p2 = scmp.eq.s32.totalorder %s1239_s15, 0  ;;  %p1145_p4 = scmp.ge.s32.totalorder %s1239_s15, 2 }
   0x6   : > { %s1325_s20 = scalar_select %p119_p0, %s1235_s14, %s121_s19  }
   0x7   : > { %p1327_p3 = por %p129_p2, %p128_p1  ;;  %308 = sbr.rel (%p1145_p4) target bundleno = 28 (0x1c), region = 40 }
   0xc   : > { %329 = sbr.rel (!%p1327_p3) target bundleno = 20 (0x14), region = 52  ;;  %s331_s22 = sand.u32 (%p1327_p3), 1, %s1235_s14  }
   0xd   : > { %s1168_s23 = sshll.u32 (%p1327_p3), %s1239_s15, 4  ;;  %s1146_s24 = sshll.u32 (%p1327_p3), %s331_s22, 6 }
   0xe   : > { %s336_s27 = scalar_lea.vmem (%p1327_p3), %s1477_s4, %s1168_s23  ;;  %s333_s28 = scalar_lea.vmem (%p1327_p3), [#allocation2], %s1146_s24 }
   0xf   : > { %v349_v0 = vld [vmem:[%s336_s27] sm:$0xff] (%p1327_p3)  ;;  %v351_v1 = vld [vmem:[%s336_s27 + $0x8] sm:$0xff] (%p1327_p3) }
  0x10   : > { %v353_v2 = vld [vmem:[%s336_s27 + $0x20] sm:$0xff] (%p1327_p3)  ;;  %350 = vst [vmem:[%s333_s28] sm:$0xff] (%p1327_p3), %v349_v0  ;;  %352 = vst [vmem:[%s333_s28 + $0x8] sm:$0xff] (%p1327_p3), %v351_v1  ;;  %v355_v3 = vld [vmem:[%s336_s27 + $0x28] sm:$0xff] (%p1327_p3) }
  0x11   : > { %354 = vst [vmem:[%s333_s28 + $0x10] sm:$0xff] %v353_v2  ;;  %v357_v4 = vld [vmem:[%s336_s27 + $0x40] sm:$0xff]  ;;  %v359_v5 = vld [vmem:[%s336_s27 + $0x48] sm:$0xff]  ;;  %356 = vst [vmem:[%s333_s28 + $0x18] sm:$0xff] %v355_v3 }
  0x12   : > { %358 = vst [vmem:[%s333_s28 + $0x20] sm:$0xff] %v357_v4  ;;  %360 = vst [vmem:[%s333_s28 + $0x28] sm:$0xff] %v359_v5  ;;  %v361_v6 = vld [vmem:[%s336_s27 + $0x60] sm:$0xff]  ;;  %v363_v7 = vld [vmem:[%s336_s27 + $0x68] sm:$0xff] }
  0x13   : > { %362 = vst [vmem:[%s333_s28 + $0x30] sm:$0xff] %v361_v6  ;;  %364 = vst [vmem:[%s333_s28 + $0x38] sm:$0xff] %v363_v7 }
  0x14 PF: > { %370 = sbr.rel (!%p1327_p3) target bundleno = 28 (0x1c), region = 75  ;;  %s372_s29 = sand.u32 (%p1327_p3), 1, %s1235_s14  }
  0x15   : > { %s1169_s30 = sshll.u32 (%p1327_p3), %s1239_s15, 4  ;;  %s1149_s11 = sshll.u32 (%p1327_p3), %s372_s29, 6 }
  0x16   : > { %s377_s19 = scalar_lea.vmem (%p1327_p3), %s1478_s5, %s1169_s30  ;;  %s374_s22 = scalar_lea.vmem (%p1327_p3), [#allocation3], %s1149_s11 }
  0x17   : > { %v390_v8 = vld [vmem:[%s377_s19] sm:$0xff] (%p1327_p3)  ;;  %v392_v9 = vld [vmem:[%s377_s19 + $0x8] sm:$0xff] (%p1327_p3) }
  0x18   : > { %v394_v10 = vld [vmem:[%s377_s19 + $0x20] sm:$0xff] (%p1327_p3)  ;;  %391 = vst [vmem:[%s374_s22] sm:$0xff] (%p1327_p3), %v390_v8  ;;  %393 = vst [vmem:[%s374_s22 + $0x8] sm:$0xff] (%p1327_p3), %v392_v9  ;;  %v396_v11 = vld [vmem:[%s377_s19 + $0x28] sm:$0xff] (%p1327_p3) }
  0x19   : > { %395 = vst [vmem:[%s374_s22 + $0x10] sm:$0xff] %v394_v10  ;;  %v398_v12 = vld [vmem:[%s377_s19 + $0x40] sm:$0xff]  ;;  %v400_v13 = vld [vmem:[%s377_s19 + $0x48] sm:$0xff]  ;;  %397 = vst [vmem:[%s374_s22 + $0x18] sm:$0xff] %v396_v11 }
  0x1a   : > { %399 = vst [vmem:[%s374_s22 + $0x20] sm:$0xff] %v398_v12  ;;  %401 = vst [vmem:[%s374_s22 + $0x28] sm:$0xff] %v400_v13  ;;  %v402_v14 = vld [vmem:[%s377_s19 + $0x60] sm:$0xff]  ;;  %v404_v15 = vld [vmem:[%s377_s19 + $0x68] sm:$0xff] }
  0x1b   : > { %403 = vst [vmem:[%s374_s22 + $0x30] sm:$0xff] %v402_v14  ;;  %405 = vst [vmem:[%s374_s22 + $0x38] sm:$0xff] %v404_v15 }
  0x1c PF: > { %p1152_p5 = scmp.ge.s32.totalorder %s1239_s15, 1  ;;  %p410_p6 = scmp.lt.s32.totalorder %s1239_s15, 3 }
  0x1e   : > { %p411_p7 = pnand %p1152_p5, %p410_p6 }
  0x1f   : > { %s1155_s21 = sshll.u32 (!%p411_p7), %s1142_s16, 1 }
  0x20   : > { %414 = sbr.rel (%p411_p7) target bundleno = 848 (0x350), region = 98  ;;  %p476_p8 = scmp.lt.s32.totalorder (!%p411_p7), %s1155_s21, 3 }
  0x25   : > { %s1489_s21 = smov (!%p476_p8, %s1155_s21), 3  ;;  %vm501_vm0 = vcmask 1043456   ;;  %v1241_v26 = vmov 839922192   ;;  %v511_v28 = vlaneseq  ;;  %v495_v42 = vld [vmem:[%s1473_s0] sm:$0x3] }
  0x26   : > { %s1350_s23 = sshll.u32 %s1489_s21, 2  ;;  %v509_v27 = vunpack.c.l.s4 %v1241_v26  ;;  %v496_v43 = vld [vmem:[%s1474_s1] sm:$0x3]  ;;  %vm842_vm1 = vcmask 261120  }
  0x27   : > { %s479_s26 = scalar_lea.vmem %s1475_s2, %s1350_s23  ;;  %s485_s29 = scalar_lea.vmem %s1476_s3, %s1350_s23  ;;  %v1364_v30 = vshrl.u32 %v511_v28, 7 }
  0x28   : > { %v497_v16 = vld [vmem:[%s479_s26] sm:$0xff]  ;;  %v510_v29 = vunpack.c.0.s8 %v509_v27 }
  0x29   : > { %v593_v17 = vld [vmem:[%s485_s29] sm:$0xff]  ;;  %v499_v18 = vcombine.high %v497_v16, %v497_v16  ;;  %v502_v19 = vsel %vm501_vm0, %v497_v16, -inf  ;;  %v532_v40 = vsub.s32 0, %v1364_v30  ;;  %v536_v41 = vsub.s32 1, %v1364_v30  ;;  %s417_s29 = sand.u32 1, %s1231_s13  }
  0x2a   : > { %v595_v20 = vcombine.high %v593_v17, %v593_v17  ;;  %v597_v22 = vsel %vm501_vm0, %v593_v17, -inf  ;;  %v513_v31 = vsub.s32 %v510_v29, %v1364_v30  ;;  %s1153_s15 = sshll.u32 %s417_s29, 6  ;;  %s493_s29 = scalar_lea.vmem %s1483_s10, %s1350_s23 }
  0x2b   : > { %v503_v21 = vsel %vm501_vm0, %v499_v18, -inf  ;;  %v1375_v44 = vrot.slane %v495_v42, %v532_v40  ;;  %v1377_v45 = vrot.slane %v495_v42, %v536_v41  ;;  %v1379_v46 = vrot.slane %v496_v43, %v532_v40  ;;  %s1426_s13 = scalar_lea.vmem [#allocation2], %s1153_s15  ;;  %s426_s16 = scalar_lea.vmem [#allocation3], %s1153_s15 }
  0x2c   : > { %v598_v23 = vsel %vm501_vm0, %v595_v20, -inf  ;;  %v504_v24 = vmax.f32 %v502_v19, %v503_v21  ;;  %v1381_v47 = vrot.slane %v496_v43, %v536_v41  ;;  %v1243_v18 = vmov 0   ;;  %v821_v19 = vld [vmem:[%s1480_s7 + $0x18] sm:$0xff]  ;;  %v819_v20 = vld [vmem:[%s1480_s7 + $0x8] sm:$0xff]  ;;  %v818_v21 = vld [vmem:[%s1480_s7] sm:$0xff] }
  0x2d   : > { %v599_v25 = vmax.f32 %v597_v22, %v598_v23  ;;  %v540_v48 = vcombine.low %v1375_v44, %v1377_v45  ;;  %1198 = vset.pattern.permute.xlu1 %v1243_v18  ;;  %1197 = vset.pattern.permute.xlu0 %v1243_v18  ;;  %v953_v22 = vld [vmem:[%s1482_s9] sm:$0x7] }
  0x2e   : > { %505 = vmax.xlane.f32.xlu0 %v504_v24  ;;  %v563_v49 = vcombine.low %v1379_v46, %v1381_v47 }
  0x32   : > { %600 = vmax.xlane.f32.xlu0 %v599_v25 }
  0xb7   : > { %v506_v32 = vpop.xlane.xlu0 %505 }
  0xb8   : > { %v514_v33 = vrot.slane %v506_v32, %v513_v31 }
  0xba   : > { %v516_v34 = vsub.f32 %v497_v16, %v514_v33  ;;  %v1242_v16 = vmov 0.0  }
  0xbb   : > { %v601_v35 = vpop.xlane.xlu0 %600  ;;  %919 = vmatprep.mubr.f32.mxu0 %v1242_v16  ;;  %1026 = vmatprep.mubr.f32.mxu1 %v1242_v16 }
  0xbc   : > { %v517_v36 = vmul.f32 1.442695, %v516_v34  ;;  %v609_v37 = vrot.slane %v601_v35, %v513_v31 }
  0xbe   : > { %1201 = vpow2.f32 %v517_v36  ;;  %v611_v38 = vsub.f32 %v593_v17, %v609_v37  ;;  %v820_v17 = vld [vmem:[%s1480_s7 + $0x10] sm:$0xff] }
  0xc0   : > { %v612_v39 = vmul.f32 1.442695, %v611_v38 }
  0xc2   : > { %1203 = vpow2.f32 %v612_v39 }
  0xcb   : > { %v1202_v50 = vpop.eup %1201 }
  0xcc   : > { %v520_v51 = vcombine.high %v1202_v50, %v1202_v50  ;;  %v542_v52 = vmul.f32 %v1202_v50, %v540_v48  ;;  %v565_v53 = vmul.f32 %v1202_v50, %v563_v49  ;;  %v522_v54 = vsel %vm501_vm0, %v1202_v50, 0.0 }
  0xce   : > { %v523_v55 = vsel %vm501_vm0, %v520_v51, 0.0  ;;  %v544_v56 = vcombine.high %v542_v52, %v542_v52  ;;  %v546_v59 = vsel %vm501_vm0, %v542_v52, 0.0  ;;  %v567_v63 = vcombine.high %v565_v53, %v565_v53 }
  0xcf   : > { %v1204_v57 = vpop.eup %1203  ;;  %v524_v58 = vadd.f32 %v523_v55, %v522_v54  ;;  %v569_v11 = vsel %vm501_vm0, %v565_v53, 0.0 }
  0xd0   : > { %v547_v60 = vsel %vm501_vm0, %v544_v56, 0.0  ;;  %v615_v61 = vcombine.high %v1204_v57, %v1204_v57  ;;  %v624_v62 = vmul.f32 %v1204_v57, %v540_v48  ;;  %v634_v1 = vmul.f32 %v1204_v57, %v563_v49 }
  0xd1   : > { %525 = vadd.xlane.f32.xlu1 %v524_v58  ;;  %v548_v0 = vadd.f32 %v547_v60, %v546_v59  ;;  %v617_v2 = vsel %vm501_vm0, %v1204_v57, 0.0  ;;  %v570_v8 = vsel %vm501_vm0, %v567_v63, 0.0 }
  0xd2   : > { %v618_v3 = vsel %vm501_vm0, %v615_v61, 0.0  ;;  %v626_v4 = vcombine.high %v624_v62, %v624_v62  ;;  %v628_v6 = vsel %vm501_vm0, %v624_v62, 0.0  ;;  %v636_v9 = vcombine.high %v634_v1, %v634_v1 }
  0xd3   : > { %549 = vadd.xlane.f32.xlu0 %v548_v0  ;;  %v619_v5 = vadd.f32 %v618_v3, %v617_v2  ;;  %v571_v12 = vadd.f32 %v570_v8, %v569_v11  ;;  %v638_v14 = vsel %vm501_vm0, %v634_v1, 0.0 }
  0xd4   : > { %v629_v7 = vsel %vm501_vm0, %v626_v4, 0.0  ;;  %v639_v13 = vsel %vm501_vm0, %v636_v9, 0.0 }
  0xd5   : > { %620 = vadd.xlane.f32.xlu1 %v619_v5  ;;  %v630_v10 = vadd.f32 %v629_v7, %v628_v6  ;;  %v640_v15 = vadd.f32 %v639_v13, %v638_v14 }
  0xd7   : > { %631 = vadd.xlane.f32.xlu0 %v630_v10 }
  0xd9   : > { %572 = vadd.xlane.f32.xlu1 %v571_v12 }
  0xdd   : > { %641 = vadd.xlane.f32.xlu1 %v640_v15 }
  0xed   : > { %839 = vperm.xlu0 %1197, %v821_v19  }
  0xee   : > { %834 = vperm.xlu1 %1198, %v820_v17  }
  0xf2   : > { %829 = vperm.xlu1 %1198, %v819_v20  }
  0xf6   : > { %824 = vperm.xlu1 %1198, %v818_v21  }
  0xfa   : > { %956 = vperm.xlu1 %1198, %v953_v22  }
 0x15a   : > { %v526_v23 = vpop.xlane.xlu1 %525 }
 0x15b   : > { %1205 = vrcp.f32 %v526_v23 }
 0x15c   : > { %v550_v25 = vpop.xlane.xlu0 %549 }
 0x15e   : > { %v621_v24 = vpop.xlane.xlu1 %620 }
 0x15f   : > { %1207 = vrcp.f32 %v621_v24 }
 0x160   : > { %v632_v36 = vpop.xlane.xlu0 %631 }
 0x162   : > { %v573_v26 = vpop.xlane.xlu1 %572 }
 0x166   : > { %v642_v41 = vpop.xlane.xlu1 %641 }
 0x168   : > { %v1206_v27 = vpop.eup %1205 }
 0x169   : > { %v551_v28 = vmul.f32 %v1206_v27, %v550_v25  ;;  %v574_v29 = vmul.f32 %v1206_v27, %v573_v26 }
 0x16b   : > { %v575_v31 = vsub.f32 %v1375_v44, %v551_v28  ;;  %v576_v32 = vsub.f32 %v1377_v45, %v551_v28  ;;  %v579_v33 = vsub.f32 %v1379_v46, %v574_v29  ;;  %v580_v34 = vsub.f32 %v1381_v47, %v574_v29 }
 0x16c   : > { %v1208_v35 = vpop.eup %1207 }
 0x16d   : > { %v577_v37 = vmul.f32 %v575_v31, %v575_v31  ;;  %v578_v38 = vmul.f32 %v576_v32, %v576_v32  ;;  %v633_v39 = vmul.f32 %v1208_v35, %v632_v36  ;;  %v581_v40 = vmul.f32 %v579_v33, %v579_v33 }
 0x16e   : > { %v582_v42 = vmul.f32 %v580_v34, %v580_v34  ;;  %v643_v43 = vmul.f32 %v1208_v35, %v642_v41 }
 0x16f   : > { %v644_v48 = vsub.f32 %v1375_v44, %v633_v39  ;;  %v645_v49 = vsub.f32 %v1377_v45, %v633_v39  ;;  %v583_v50 = vadd.f32 %v581_v40, %v577_v37 }
 0x170   : > { %v584_v51 = vadd.f32 %v582_v42, %v578_v38  ;;  %v648_v52 = vsub.f32 %v1379_v46, %v643_v43  ;;  %v649_v53 = vsub.f32 %v1381_v47, %v643_v43 }
 0x171   : > { %v646_v54 = vmul.f32 %v644_v48, %v644_v48  ;;  %v647_v55 = vmul.f32 %v645_v49, %v645_v49  ;;  %v585_v56 = vmul.f32 100.0, %v583_v50 }
 0x172   : > { %v586_v57 = vmul.f32 100.0, %v584_v51  ;;  %v650_v58 = vmul.f32 %v648_v52, %v648_v52  ;;  %v651_v59 = vmul.f32 %v649_v53, %v649_v53 }
 0x173   : > { %v587_v60 = vsub.f32 0.0, %v585_v56  ;;  %v768_v56 = vsub.s32 3, %v1364_v30  ;;  %v764_v30 = vld [vmem:[%s1426_s13 + $0x30] sm:$0xff] }
 0x174   : > { %v588_v61 = vsub.f32 0.0, %v586_v57  ;;  %v652_v62 = vadd.f32 %v650_v58, %v646_v54  ;;  %v653_v63 = vadd.f32 %v651_v59, %v647_v55 }
 0x175   : > { %v589_v0 = vmul.f32 1.442695, %v587_v60 }
 0x176   : > { %v591_v44 = vmul.f32 1.442695, %v588_v61  ;;  %v654_v1 = vmul.f32 100.0, %v652_v62  ;;  %v655_v45 = vmul.f32 100.0, %v653_v63 }
 0x177   : > { %1209 = vpow2.f32 %v589_v0 }
 0x178   : > { %v656_v2 = vsub.f32 0.0, %v654_v1  ;;  %v657_v3 = vsub.f32 0.0, %v655_v45  ;;  %1211 = vpow2.f32 %v591_v44 }
 0x17a   : > { %v658_v46 = vmul.f32 1.442695, %v656_v2  ;;  %v660_v47 = vmul.f32 1.442695, %v657_v3 }
 0x17c   : > { %1213 = vpow2.f32 %v658_v46 }
 0x17d   : > { %1215 = vpow2.f32 %v660_v47  ;;  %v788_v47 = vld [vmem:[%s426_s16 + $0x30] sm:$0xff] }
 0x184   : > { %v1210_v4 = vpop.eup %1209 }
 0x185   : > { %v1212_v5 = vpop.eup %1211  ;;  %v664_v6 = vsub.f32 1.0, %v1210_v4  ;;  %v765_v4 = vld [vmem:[%s1426_s13 + $0x38] sm:$0xff] }
 0x186   : > { %v665_v8 = vsub.f32 1.0, %v1212_v5  ;;  %v789_v5 = vld [vmem:[%s426_s16 + $0x38] sm:$0xff] }
 0x187   : > { %v688_v12 = vrot.slane %v664_v6, 7  ;;  %v718_v23 = vrot.slane %v664_v6, 6  ;;  %v746_v39 = vrot.slane %v664_v6, 5 }
 0x188   : > { %v689_v14 = vrot.slane %v665_v8, 7  ;;  %v719_v26 = vrot.slane %v665_v8, 6  ;;  %v747_v43 = vrot.slane %v665_v8, 5 }
 0x189   : > { %v1214_v7 = vpop.eup %1213 }
 0x18a   : > { %v1216_v9 = vpop.eup %1215  ;;  %v666_v10 = vsub.f32 1.0, %v1214_v7 }
 0x18b   : > { %v667_v11 = vsub.f32 1.0, %v1216_v9 }
 0x18c   : > { %v668_v13 = vmul.f32 %v666_v10, %v664_v6  ;;  %v696_v19 = vrot.slane %v666_v10, 7  ;;  %v724_v32 = vrot.slane %v666_v10, 6  ;;  %v752_v51 = vrot.slane %v666_v10, 5 }
 0x18d   : > { %v669_v15 = vmul.f32 %v667_v11, %v665_v8  ;;  %v697_v22 = vrot.slane %v667_v11, 7  ;;  %v725_v35 = vrot.slane %v667_v11, 6  ;;  %v753_v55 = vrot.slane %v667_v11, 5 }
 0x18e   : > { %v672_v17 = vrot.slane %v668_v13, 1  ;;  %v692_v18 = vmul.f32 %v688_v12, %v668_v13  ;;  %v763_v12 = vld [vmem:[%s1426_s13 + $0x28] sm:$0xff]  ;;  %v785_v13 = vld [vmem:[%s426_s16 + $0x18] sm:$0xff] }
 0x18f   : > { %v673_v20 = vrot.slane %v669_v15, 1  ;;  %v693_v21 = vmul.f32 %v689_v14, %v669_v15 }
 0x190   : > { %v676_v24 = vmul.f32 %v1214_v7, %v672_v17  ;;  %v700_v25 = vmul.f32 %v696_v19, %v692_v18  ;;  %v762_v18 = vld [vmem:[%s1426_s13 + $0x20] sm:$0xff]  ;;  %v784_v19 = vld [vmem:[%s426_s16 + $0x10] sm:$0xff] }
 0x191   : > { %v677_v27 = vmul.f32 %v1216_v9, %v673_v20  ;;  %v701_v28 = vmul.f32 %v697_v22, %v693_v21  ;;  %v761_v22 = vld [vmem:[%s1426_s13 + $0x18] sm:$0xff] }
 0x192   : > { %v704_v29 = vrot.slane %v700_v25, 2  ;;  %v722_v31 = vmul.f32 %v718_v23, %v700_v25  ;;  %v680_v36 = vrot.slane %v676_v24, 7  ;;  %v783_v23 = vld [vmem:[%s426_s16 + $0x8] sm:$0xff] }
 0x193   : > { %v705_v33 = vrot.slane %v701_v28, 2  ;;  %v723_v34 = vmul.f32 %v719_v26, %v701_v28  ;;  %v681_v40 = vrot.slane %v677_v27, 7  ;;  %v760_v27 = vld [vmem:[%s1426_s13 + $0x10] sm:$0xff]  ;;  %v782_v28 = vld [vmem:[%s426_s16] sm:$0xff] }
 0x194   : > { %v708_v37 = vmul.f32 %v1214_v7, %v704_v29  ;;  %v728_v38 = vmul.f32 %v724_v32, %v722_v31  ;;  %v684_v57 = vadd.f32 %v1214_v7, %v680_v36  ;;  %v759_v32 = vld [vmem:[%s1426_s13 + $0x8] sm:$0xff]  ;;  %v758_v36 = vld [vmem:[%s1426_s13] sm:$0xff] }
 0x195   : > { %v709_v41 = vmul.f32 %v1216_v9, %v705_v33  ;;  %v729_v42 = vmul.f32 %v725_v35, %v723_v34  ;;  %v685_v60 = vadd.f32 %v1216_v9, %v681_v40 }
 0x196   : > { %v712_v48 = vrot.slane %v708_v37, 6  ;;  %v732_v49 = vrot.slane %v728_v38, 3  ;;  %v750_v50 = vmul.f32 %v746_v39, %v728_v38 }
 0x197   : > { %v713_v52 = vrot.slane %v709_v41, 6  ;;  %v733_v53 = vrot.slane %v729_v42, 3  ;;  %v751_v54 = vmul.f32 %v747_v43, %v729_v42 }
 0x198   : > { %v736_v58 = vmul.f32 %v1214_v7, %v732_v49  ;;  %v756_v59 = vmul.f32 %v752_v51, %v750_v50  ;;  %v716_v63 = vadd.f32 %v712_v48, %v684_v57  ;;  %v787_v7 = vld [vmem:[%s426_s16 + $0x28] sm:$0xff]  ;;  %v814_v50 = vld [vmem:[%s1479_s6] sm:$0xff]  ;;  %v835_v57 = vpop.permute.xlu1 %834 }
 0x199   : > { %v737_v61 = vmul.f32 %v1216_v9, %v733_v53  ;;  %v757_v62 = vmul.f32 %v753_v55, %v751_v54  ;;  %v717_v44 = vadd.f32 %v713_v52, %v685_v60  ;;  %v786_v9 = vld [vmem:[%s426_s16 + $0x20] sm:$0xff]  ;;  %v815_v51 = vld [vmem:[%s1479_s6 + $0x8] sm:$0xff]  ;;  %v816_v52 = vld [vmem:[%s1479_s6 + $0x10] sm:$0xff] }
 0x19a   : > { %v740_v0 = vrot.slane %v736_v58, 5  ;;  %v769_v2 = vrot.slane %v756_v59, %v768_v56  ;;  %v817_v53 = vld [vmem:[%s1479_s6 + $0x18] sm:$0xff] }
 0x19b   : > { %v741_v1 = vrot.slane %v737_v61, 5  ;;  %v773_v46 = vrot.slane %v757_v62, %v768_v56  ;;  %v840_v62 = vpop.permute.xlu0 %839 }
 0x19c   : > { %v744_v45 = vadd.f32 %v740_v0, %v716_v63  ;;  %v780_v10 = vmul.f32 %v769_v2, %v764_v30  ;;  %v778_v29 = vmul.f32 %v769_v2, %v762_v18  ;;  %v776_v38 = vmul.f32 %v769_v2, %v760_v27  ;;  %v830_v61 = vpop.permute.xlu1 %829 }
 0x19d   : > { %v745_v3 = vadd.f32 %v741_v1, %v717_v44  ;;  %v781_v14 = vmul.f32 %v773_v46, %v765_v4  ;;  %v779_v25 = vmul.f32 %v773_v46, %v763_v12  ;;  %v777_v34 = vmul.f32 %v773_v46, %v761_v22  ;;  %v952_v12 = vld [vmem:[%s1481_s8] sm:$0x7] }
 0x19e   : > { %v793_v6 = vrot.slane %v744_v45, %v768_v56  ;;  %v775_v41 = vmul.f32 %v773_v46, %v759_v32  ;;  %v774_v43 = vmul.f32 %v769_v2, %v758_v36 }
 0x19f   : > { %v797_v8 = vrot.slane %v745_v3, %v768_v56 }
 0x1a0   : > { %v804_v11 = vmul.f32 %v793_v6, %v788_v47  ;;  %v802_v21 = vmul.f32 %v793_v6, %v786_v9  ;;  %v800_v31 = vmul.f32 %v793_v6, %v784_v19  ;;  %v798_v39 = vmul.f32 %v793_v6, %v782_v28  ;;  %v825_v2 = vpop.permute.xlu1 %824 }
 0x1a1   : > { %v805_v15 = vmul.f32 %v797_v8, %v789_v5  ;;  %v803_v17 = vmul.f32 %v797_v8, %v787_v7  ;;  %v801_v26 = vmul.f32 %v797_v8, %v785_v13  ;;  %v799_v35 = vmul.f32 %v797_v8, %v783_v23 }
 0x1a2   : > { %v812_v20 = vadd.f32 %v804_v11, %v780_v10  ;;  %v810_v37 = vadd.f32 %v802_v21, %v778_v29  ;;  %v808_v42 = vadd.f32 %v800_v31, %v776_v38  ;;  %v806_v49 = vadd.f32 %v798_v39, %v774_v43 }
 0x1a3   : > { %v813_v24 = vadd.f32 %v805_v15, %v781_v14  ;;  %v811_v33 = vadd.f32 %v803_v17, %v779_v25  ;;  %v809_v40 = vadd.f32 %v801_v26, %v777_v34  ;;  %v807_v48 = vadd.f32 %v799_v35, %v775_v41 }
 0x1a4   : > { %v957_v14 = vpop.permute.xlu1 %956 }
 0x1a5   : > { %879 = vmatprep.subr.mxu0 %v813_v24 }
 0x1a6   : > { %880 = vmatpush1.msra.mxu0 %v812_v20 }
 0x1a7   : > { %881 = vmatprep.subr.mxu0 %v811_v33 }
 0x1a8   : > { %882 = vmatpush1.msra.mxu0 %v810_v37 }
 0x1a9   : > { %883 = vmatprep.subr.mxu0 %v809_v40 }
 0x1aa   : > { %884 = vmatpush1.msra.mxu0 %v808_v42 }
 0x1ab   : > { %885 = vmatprep.subr.mxu0 %v807_v48 }
 0x1ac   : > { %886 = vmatpush1.msra.mxu0 %v806_v49 }
 0x1ad   : > { %1161 = vmatmul.mubr.msk.f32.vlgmr.msra.gmra.mxu0 %vm842_vm1, %v814_v50 }
 0x1ae   : > { %925 = vmatprep.mubr.f32.mxu0 %v1242_v16 }
 0x1b1   : > { %1162 = vmatmul.mubr.msk.f32.gmra.mxu0 %vm842_vm1, %v815_v51 }
 0x1b2   : > { %931 = vmatprep.mubr.f32.mxu0 %v1242_v16 }
 0x1b5   : > { %1163 = vmatmul.mubr.msk.f32.gmra.mxu0 %vm842_vm1, %v816_v52 }
 0x1b6   : > { %937 = vmatprep.mubr.f32.mxu0 %v1242_v16 }
 0x1b9   : > { %1164 = vmatmul.mubr.msk.f32.gmra.mxu0 %vm842_vm1, %v817_v53 }
 0x26d   : > { %v921_v54 = vpop.f32.mrf.mxu0 }
 0x26e   : > { %v922_v6 = vadd.f32 %v921_v54, %v825_v2 }
 0x26f   : > { %v923_v55 = vpop.f32.mrf.mxu0 }
 0x270   : > { %v924_v4 = vadd.f32 %v923_v55, %v825_v2  ;;  %v944_v11 = vmax.f32 %v922_v6, 0.0 }
 0x271   : > { %v927_v56 = vpop.f32.mrf.mxu0 }
 0x272   : > { %v928_v30 = vadd.f32 %v927_v56, %v830_v61  ;;  %v945_v10 = vmax.f32 %v924_v4, 0.0 }
 0x273   : > { %v929_v58 = vpop.f32.mrf.mxu0 }
 0x274   : > { %v930_v3 = vadd.f32 %v929_v58, %v830_v61  ;;  %v946_v9 = vmax.f32 %v928_v30, 0.0 }
 0x275   : > { %v933_v59 = vpop.f32.mrf.mxu0 }
 0x276   : > { %v934_v45 = vadd.f32 %v933_v59, %v835_v57  ;;  %v947_v8 = vmax.f32 %v930_v3, 0.0 }
 0x277   : > { %v935_v60 = vpop.f32.mrf.mxu0 }
 0x278   : > { %v936_v1 = vadd.f32 %v935_v60, %v835_v57  ;;  %v948_v7 = vmax.f32 %v934_v45, 0.0 }
 0x279   : > { %v939_v63 = vpop.f32.mrf.mxu0 }
 0x27a   : > { %v940_v0 = vadd.f32 %v939_v63, %v840_v62  ;;  %v949_v5 = vmax.f32 %v936_v1, 0.0 }
 0x27b   : > { %v941_v44 = vpop.f32.mrf.mxu0 }
 0x27c   : > { %v942_v16 = vadd.f32 %v941_v44, %v840_v62  ;;  %v950_v47 = vmax.f32 %v940_v0, 0.0 }
 0x27e   : > { %v951_v46 = vmax.f32 %v942_v16, 0.0 }
 0x280   : > { %986 = vmatprep.subr.mxu1 %v951_v46 }
 0x281   : > { %987 = vmatpush1.msra.mxu1 %v950_v47 }
 0x282   : > { %988 = vmatprep.subr.mxu1 %v949_v5 }
 0x283   : > { %989 = vmatpush1.msra.mxu1 %v948_v7 }
 0x284   : > { %990 = vmatprep.subr.mxu1 %v947_v8 }
 0x285   : > { %991 = vmatpush1.msra.mxu1 %v946_v9 }
 0x286   : > { %992 = vmatprep.subr.mxu1 %v945_v10 }
 0x287   : > { %993 = vmatpush1.msra.mxu1 %v944_v11 }
 0x288   : > { %1165 = vmatmul.mubr.msk.f32.vlgmr.msra.gmra.mxu1 %vm842_vm1, %v952_v12 }
 0x348   : > { %v1028_v13 = vpop.f32.mrf.mxu1 }
 0x349   : > { %v1029_v17 = vadd.f32 %v1028_v13, %v957_v14 }
 0x34a   : > { %v1030_v15 = vpop.f32.mrf.mxu1 }
 0x34b   : > { %v1031_v18 = vadd.f32 %v1030_v15, %v957_v14 }
 0x34d   : > { %v1035_v19 = vcombine.low %v1029_v17, %v1031_v18 }
 0x34f   : > { %1037 = vst [vmem:[%s493_s29] sm:$0x77] %v1035_v19 }
 0x350 PF: > { %p17_p9 = scmp.ge.s32.totalorder %s1316_s17, 4   ;;  %s1485_s13 = smov %s1235_s14 }
 0x351   : > { %s1486_s14 = smov %s1325_s20  ;;  %s1487_s15 = smov %s1316_s17 }
 0x352   :  { %19 = sbr.rel (!%p17_p9) target bundleno = 2 (0x2), region = 155 }

// kernel: transporter_forward.4
= control target key start
LH: loop header
LB: loop body
LE: loop exit
PB: predicated region body
PF: predicated region fallthrough
CT: control target
= control target key end

     0   :  { %s1146_s13 = smov 0   ;;  %s1148_s14 = smov 0   ;;  %s1328_s0 = inlined_call_operand.vmem [shape: f32[3,512], index: 0, kind: input, shape index: {}]   ;;  %s1329_s1 = inlined_call_operand.vmem [shape: f32[32,3], index: 1, kind: input, shape index: {}]   ;;  %s1330_s2 = inlined_call_operand.vmem [shape: f32[32,1], index: 2, kind: input, shape index: {}]   ;;  %s1331_s3 = inlined_call_operand.vmem [shape: f32[32,32], index: 3, kind: input, shape index: {}]   ;;  %s1332_s4 = inlined_call_operand.vmem [shape: f32[32,1], index: 4, kind: input, shape index: {}]   ;;  %s1333_s5 = inlined_call_operand.vmem [shape: f32[32,3], index: 5, kind: input, shape index: {}]   ;;  %s1334_s6 = inlined_call_operand.vmem [shape: f32[32,1], index: 6, kind: input, shape index: {}]   ;;  %s1335_s7 = inlined_call_operand.vmem [shape: f32[4,32], index: 7, kind: input, shape index: {}]   ;;  %s1336_s8 = inlined_call_operand.vmem [shape: f32[4,1], index: 8, kind: input, shape index: {}]   ;;  %s1337_s9 = inlined_call_operand.vmem [shape: f32[32,512], index: 9, kind: output, shape index: {0}]   ;;  %s1338_s10 = inlined_call_operand.vmem [shape: f32[4,512], index: 10, kind: output, shape index: {1}]  }
   0x1   :  { %s1150_s15 = smov 0  }
   0x2 LB: > { %s1159_s16 = sadd.s32 4294967295, %s1087_s15   ;;  %s1161_s17 = sadd.s32 1, %s1087_s15   ;;  %s1087_s15 = sphi %s1150_s15, %s1342_s15   ;;  %s1083_s14 = sphi %s1148_s14, %s1341_s14   ;;  %s1079_s13 = sphi %s1146_s13, %s1340_s13  }
   0x3   : > { %s219_s18 = ssub.s32 %s1087_s15, %s1161_s17  ;;  %s222_s19 = sadd.s32 1, %s1083_s14 }
   0x4   : > { %p220_p0 = scmp.eq.s32.totalorder %s219_s18, 0  ;;  %p232_p1 = scmp.ne.s32.totalorder %s1083_s14, %s1079_s13 }
   0x5   : > { %p233_p2 = scmp.eq.s32.totalorder %s1159_s16, 1  ;;  %p1007_p3 = scmp.ge.s32.totalorder %s1087_s15, 1 }
   0x6   : > { %s1169_s20 = scalar_select %p220_p0, %s1083_s14, %s222_s19  }
   0x7   : > { %p1171_p4 = por %p233_p2, %p232_p1  ;;  %p316_p5 = scmp.lt.s32.totalorder %s1087_s15, 3 }
   0x9   : > { %p317_p6 = pnand %p1007_p3, %p316_p5 }
   0xa   : > { %s1009_s22 = sshll.u32 (!%p317_p6), %s1159_s16, 1  ;;  %s348_s11 = sand.u32 (!%p317_p6), 1, %s1079_s13  }
   0xb   : > { %320 = sbr.rel (%p317_p6) target bundleno = 462 (0x1ce), region = 56  ;;  %p359_p7 = scmp.lt.s32.totalorder (!%p317_p6), %s1009_s22, 3 }
   0xc   : > { %s1008_s12 = sshll.u32 (!%p317_p6), %s348_s11, 6 }
   0xd   : > { %s1289_s15 = scalar_lea.vmem (!%p317_p6), [#allocation2], %s1008_s12 }
  0x10   : > { %v1089_v0 = vmov 0.0   ;;  %v1090_v1 = vmov 0   ;;  %s1344_s22 = smov (!%p359_p7, %s1009_s22), 3  ;;  %v379_v2 = vld [vmem:[%s1330_s2 + $0x18] sm:$0xff]  ;;  %v377_v3 = vld [vmem:[%s1330_s2 + $0x8] sm:$0xff]  ;;  %v378_v4 = vld [vmem:[%s1330_s2 + $0x10] sm:$0xff] }
  0x11   : > { %484 = vmatprep.mubr.f32.mxu0 %v1089_v0  ;;  %622 = vmatprep.mubr.f32.mxu1 %v1089_v0  ;;  %s1010_s27 = sshll.u32 %s1344_s22, 2  ;;  %v376_v5 = vld [vmem:[%s1330_s2] sm:$0xff]  ;;  %vm415_vm0 = vcmask 1042432   ;;  %vm402_vm1 = vcmask 23552   ;;  %v662_v9 = vld [vmem:[%s1334_s6 + $0x18] sm:$0xff]  ;;  %v661_v10 = vld [vmem:[%s1334_s6 + $0x10] sm:$0xff] }
  0x12   : > { %1063 = vset.pattern.permute.xlu1 %v1090_v1  ;;  %1062 = vset.pattern.permute.xlu0 %v1090_v1  ;;  %s362_s18 = scalar_lea.vmem %s1328_s0, %s1010_s27  ;;  %v372_v8 = vld [vmem:[%s1329_s1] sm:$0xff]  ;;  %v373_v11 = vld [vmem:[%s1329_s1 + $0x8] sm:$0xff]  ;;  %v374_v14 = vld [vmem:[%s1329_s1 + $0x10] sm:$0xff]  ;;  %vm545_vm2 = vcmask 261120   ;;  %s369_s19 = scalar_lea.vmem %s1338_s10, %s1010_s27 }
  0x13   : > { %397 = vperm.xlu0 %1062, %v379_v2   ;;  %387 = vperm.xlu1 %1063, %v377_v3   ;;  %v371_v6 = vld [vmem:[%s362_s18] sm:$0x77]  ;;  %v660_v12 = vld [vmem:[%s1334_s6 + $0x8] sm:$0xff]  ;;  %v375_v17 = vld [vmem:[%s1329_s1 + $0x18] sm:$0xff]  ;;  %s1035_s23 = sshll.u32 (%p1171_p4), %s1159_s16, 4 }
  0x14   : > { %v401_v7 = vcombine.high %v371_v6, %v371_v6  ;;  %v659_v13 = vld [vmem:[%s1334_s6] sm:$0xff]  ;;  %v522_v18 = vld [vmem:[%s1332_s4 + $0x8] sm:$0xff]  ;;  %v523_v19 = vld [vmem:[%s1332_s4 + $0x10] sm:$0xff]  ;;  %s892_s24 = scalar_lea.vmem (%p1171_p4), %s1337_s9, %s1035_s23 }
  0x15   : > { %v793_v15 = vld [vmem:[%s1336_s8] sm:$0xf]  ;;  %v524_v21 = vld [vmem:[%s1332_s4 + $0x18] sm:$0xff]  ;;  %v656_v22 = vld [vmem:[%s1333_s5 + $0x8] sm:$0xff] }
  0x16   : > { %1013 = vmatprep.subr.msk.mxu0 %vm415_vm0, %v401_v7  ;;  %v521_v16 = vld [vmem:[%s1332_s4] sm:$0xff]  ;;  %v657_v23 = vld [vmem:[%s1333_s5 + $0x10] sm:$0xff]  ;;  %v658_v24 = vld [vmem:[%s1333_s5 + $0x18] sm:$0xff] }
  0x17   : > { %392 = vperm.xlu0 %1062, %v378_v4   ;;  %382 = vperm.xlu1 %1063, %v376_v5   ;;  %v655_v20 = vld [vmem:[%s1333_s5] sm:$0xff]  ;;  %v518_v63 = vld [vmem:[%s1331_s3 + $0x8] sm:$0xff] }
  0x18   : > { %1014 = vmatpush1.msk.msra.mxu0 %vm415_vm0, %v371_v6  ;;  %v517_v58 = vld [vmem:[%s1331_s3] sm:$0xff] }
  0x19   : > { %1015 = vmatmul.mubr.msk.f32.vlgmr.msra.gmra.mxu0 %vm402_vm1, %v372_v8  ;;  %1023 = vmatprep.subr.msk.mxu0 %vm415_vm0, %v401_v7  ;;  %v519_v7 = vld [vmem:[%s1331_s3 + $0x10] sm:$0xff] }
  0x1a   : > { %490 = vmatprep.mubr.f32.mxu0 %v1089_v0  ;;  %1024 = vmatpush1.msk.msra.mxu0 %vm415_vm0, %v371_v6 }
  0x1b   : > { %680 = vperm.xlu0 %1062, %v662_v9   ;;  %675 = vperm.xlu1 %1063, %v661_v10  }
  0x1d   : > { %1016 = vmatmul.mubr.msk.f32.gmra.mxu0 %vm402_vm1, %v373_v11 }
  0x1e   : > { %496 = vmatprep.mubr.f32.mxu0 %v1089_v0 }
  0x1f   : > { %670 = vperm.xlu0 %1062, %v660_v12   ;;  %665 = vperm.xlu1 %1063, %v659_v13  }
  0x21   : > { %1017 = vmatmul.mubr.msk.f32.gmra.mxu0 %vm402_vm1, %v374_v14 }
  0x22   : > { %502 = vmatprep.mubr.f32.mxu0 %v1089_v0 }
  0x23   : > { %796 = vperm.xlu0 %1062, %v793_v15   ;;  %527 = vperm.xlu1 %1063, %v521_v16  }
  0x25   : > { %1018 = vmatmul.mubr.msk.f32.gmra.mxu0 %vm402_vm1, %v375_v17  ;;  %v520_v17 = vld [vmem:[%s1331_s3 + $0x18] sm:$0xff] }
  0x26   : > { %759 = vmatprep.mubr.f32.mxu0 %v1089_v0 }
  0x27   : > { %532 = vperm.xlu0 %1062, %v522_v18   ;;  %537 = vperm.xlu1 %1063, %v523_v19  }
  0x29   : > { %1025 = vmatmul.mubr.msk.f32.vlgmr.msra.gmra.mxu0 %vm402_vm1, %v655_v20 }
  0x2a   : > { %765 = vmatprep.mubr.f32.mxu0 %v1089_v0 }
  0x2b   : > { %542 = vperm.xlu0 %1062, %v524_v21  }
  0x2d   : > { %1026 = vmatmul.mubr.msk.f32.gmra.mxu0 %vm402_vm1, %v656_v22  ;;  %v792_v22 = vld [vmem:[%s1335_s7] sm:$0xf] }
  0x2e   : > { %771 = vmatprep.mubr.f32.mxu0 %v1089_v0 }
  0x31   : > { %1027 = vmatmul.mubr.msk.f32.gmra.mxu0 %vm402_vm1, %v657_v23 }
  0x32   : > { %777 = vmatprep.mubr.f32.mxu0 %v1089_v0 }
  0x35   : > { %1028 = vmatmul.mubr.msk.f32.gmra.mxu0 %vm402_vm1, %v658_v24 }
  0x8e   : > { %v398_v29 = vpop.permute.xlu0 %397  ;;  %v388_v32 = vpop.permute.xlu1 %387 }
  0x92   : > { %v393_v34 = vpop.permute.xlu0 %392  ;;  %v383_v41 = vpop.permute.xlu1 %382 }
  0x96   : > { %v681_v59 = vpop.permute.xlu0 %680  ;;  %v676_v61 = vpop.permute.xlu1 %675 }
  0x9a   : > { %v671_v5 = vpop.permute.xlu0 %670  ;;  %v666_v10 = vpop.permute.xlu1 %665 }
  0x9e   : > { %v797_v23 = vpop.permute.xlu0 %796  ;;  %v528_v24 = vpop.permute.xlu1 %527 }
  0xd9   : > { %v486_v25 = vpop.f32.mrf.mxu0 }
  0xda   : > { %v487_v49 = vadd.f32 %v486_v25, %v383_v41 }
  0xdb   : > { %v488_v26 = vpop.f32.mrf.mxu0 }
  0xdc   : > { %v489_v47 = vadd.f32 %v488_v26, %v383_v41  ;;  %v509_v56 = vmax.f32 %v487_v49, 0.0 }
  0xdd   : > { %v492_v27 = vpop.f32.mrf.mxu0 }
  0xde   : > { %v493_v44 = vadd.f32 %v492_v27, %v388_v32  ;;  %v510_v55 = vmax.f32 %v489_v47, 0.0 }
  0xdf   : > { %v494_v28 = vpop.f32.mrf.mxu0 }
  0xe0   : > { %v495_v42 = vadd.f32 %v494_v28, %v388_v32  ;;  %v511_v53 = vmax.f32 %v493_v44, 0.0  ;;  %v533_v28 = vpop.permute.xlu0 %532 }
  0xe1   : > { %v498_v30 = vpop.f32.mrf.mxu0 }
  0xe2   : > { %v499_v39 = vadd.f32 %v498_v30, %v393_v34  ;;  %v512_v52 = vmax.f32 %v495_v42, 0.0 }
  0xe3   : > { %v500_v31 = vpop.f32.mrf.mxu0 }
  0xe4   : > { %v501_v37 = vadd.f32 %v500_v31, %v393_v34  ;;  %v513_v50 = vmax.f32 %v499_v39, 0.0 }
  0xe5   : > { %v504_v33 = vpop.f32.mrf.mxu0 }
  0xe6   : > { %v505_v35 = vadd.f32 %v504_v33, %v398_v29  ;;  %v514_v48 = vmax.f32 %v501_v37, 0.0  ;;  %v538_v33 = vpop.permute.xlu1 %537 }
  0xe7   : > { %v506_v36 = vpop.f32.mrf.mxu0 }
  0xe8   : > { %v507_v38 = vadd.f32 %v506_v36, %v398_v29  ;;  %v515_v45 = vmax.f32 %v505_v35, 0.0 }
  0xe9   : > { %v761_v40 = vpop.f32.mrf.mxu0 }
  0xea   : > { %v516_v43 = vmax.f32 %v507_v38, 0.0  ;;  %v762_v15 = vadd.f32 %v761_v40, %v666_v10  ;;  %v543_v38 = vpop.permute.xlu0 %542 }
  0xeb   : > { %v763_v46 = vpop.f32.mrf.mxu0 }
  0xec   : > { %582 = vmatprep.subr.mxu1 %v516_v43  ;;  %v764_v13 = vadd.f32 %v763_v46, %v666_v10  ;;  %v784_v21 = vmax.f32 %v762_v15, 0.0 }
  0xed   : > { %583 = vmatpush1.msra.mxu1 %v515_v45  ;;  %v767_v51 = vpop.f32.mrf.mxu0 }
  0xee   : > { %584 = vmatprep.subr.mxu1 %v514_v48  ;;  %v768_v11 = vadd.f32 %v767_v51, %v671_v5  ;;  %v785_v20 = vmax.f32 %v764_v13, 0.0 }
  0xef   : > { %585 = vmatpush1.msra.mxu1 %v513_v50  ;;  %v769_v54 = vpop.f32.mrf.mxu0 }
  0xf0   : > { %586 = vmatprep.subr.mxu1 %v512_v52  ;;  %v770_v8 = vadd.f32 %v769_v54, %v671_v5  ;;  %v786_v19 = vmax.f32 %v768_v11, 0.0 }
  0xf1   : > { %587 = vmatpush1.msra.mxu1 %v511_v53  ;;  %v773_v57 = vpop.f32.mrf.mxu0 }
  0xf2   : > { %588 = vmatprep.subr.mxu1 %v510_v55  ;;  %v774_v6 = vadd.f32 %v773_v57, %v676_v61  ;;  %v787_v18 = vmax.f32 %v770_v8, 0.0 }
  0xf3   : > { %589 = vmatpush1.msra.mxu1 %v509_v56  ;;  %v775_v60 = vpop.f32.mrf.mxu0 }
  0xf4   : > { %1019 = vmatmul.mubr.msk.f32.vlgmr.msra.gmra.mxu1 %vm545_vm2, %v517_v58  ;;  %v776_v3 = vadd.f32 %v775_v60, %v676_v61  ;;  %v788_v16 = vmax.f32 %v774_v6, 0.0 }
  0xf5   : > { %v779_v62 = vpop.f32.mrf.mxu0  ;;  %628 = vmatprep.mubr.f32.mxu1 %v1089_v0 }
  0xf6   : > { %v780_v1 = vadd.f32 %v779_v62, %v681_v59  ;;  %v789_v14 = vmax.f32 %v776_v3, 0.0 }
  0xf7   : > { %v781_v2 = vpop.f32.mrf.mxu0 }
  0xf8   : > { %v782_v4 = vadd.f32 %v781_v2, %v681_v59  ;;  %1020 = vmatmul.mubr.msk.f32.gmra.mxu1 %vm545_vm2, %v518_v63  ;;  %v790_v12 = vmax.f32 %v780_v1, 0.0 }
  0xf9   : > { %634 = vmatprep.mubr.f32.mxu1 %v1089_v0 }
  0xfa   : > { %v791_v9 = vmax.f32 %v782_v4, 0.0 }
  0xfc   : > { %1021 = vmatmul.mubr.msk.f32.gmra.mxu1 %vm545_vm2, %v519_v7  ;;  %826 = vmatprep.subr.mxu1 %v791_v9 }
  0xfd   : > { %827 = vmatpush1.msra.mxu1 %v790_v12  ;;  %640 = vmatprep.mubr.f32.mxu1 %v1089_v0 }
  0xfe   : > { %828 = vmatprep.subr.mxu1 %v789_v14 }
  0xff   : > { %829 = vmatpush1.msra.mxu1 %v788_v16 }
 0x100   : > { %1022 = vmatmul.mubr.msk.f32.gmra.mxu1 %vm545_vm2, %v520_v17  ;;  %830 = vmatprep.subr.mxu1 %v787_v18 }
 0x101   : > { %831 = vmatpush1.msra.mxu1 %v786_v19  ;;  %866 = vmatprep.mubr.f32.mxu1 %v1089_v0 }
 0x102   : > { %832 = vmatprep.subr.mxu1 %v785_v20 }
 0x103   : > { %833 = vmatpush1.msra.mxu1 %v784_v21 }
 0x104   : > { %1029 = vmatmul.mubr.msk.f32.vlgmr.msra.gmra.mxu1 %vm545_vm2, %v792_v22 }
 0x1b4   : > { %v624_v25 = vpop.f32.mrf.mxu1 }
 0x1b5   : > { %v625_v26 = vadd.f32 %v624_v25, %v528_v24 }
 0x1b6   : > { %v626_v27 = vpop.f32.mrf.mxu1 }
 0x1b7   : > { %647 = vst [vmem:[%s1289_s15] sm:$0xff] %v625_v26  ;;  %v627_v0 = vadd.f32 %v626_v27, %v528_v24 }
 0x1b8   : > { %v630_v29 = vpop.f32.mrf.mxu1 }
 0x1b9   : > { %648 = vst [vmem:[%s1289_s15 + $0x8] sm:$0xff] %v627_v0  ;;  %v631_v30 = vadd.f32 %v630_v29, %v533_v28 }
 0x1ba   : > { %v632_v31 = vpop.f32.mrf.mxu1 }
 0x1bb   : > { %649 = vst [vmem:[%s1289_s15 + $0x10] sm:$0xff] %v631_v30  ;;  %v633_v32 = vadd.f32 %v632_v31, %v533_v28 }
 0x1bc   : > { %v636_v34 = vpop.f32.mrf.mxu1 }
 0x1bd   : > { %650 = vst [vmem:[%s1289_s15 + $0x18] sm:$0xff] %v633_v32  ;;  %v637_v35 = vadd.f32 %v636_v34, %v538_v33 }
 0x1be   : > { %v638_v36 = vpop.f32.mrf.mxu1  ;;  %v905_v48 = vld [vmem:[%s1289_s15] sm:$0xff] (%p1171_p4) }
 0x1bf   : > { %651 = vst [vmem:[%s1289_s15 + $0x20] sm:$0xff] %v637_v35  ;;  %v639_v37 = vadd.f32 %v638_v36, %v538_v33  ;;  %906 = vst [vmem:[%s892_s24] sm:$0xff] (%p1171_p4), %v905_v48 }
 0x1c0   : > { %v642_v39 = vpop.f32.mrf.mxu1  ;;  %v907_v49 = vld [vmem:[%s1289_s15 + $0x8] sm:$0xff] (%p1171_p4) }
 0x1c1   : > { %652 = vst [vmem:[%s1289_s15 + $0x28] sm:$0xff] %v639_v37  ;;  %v643_v40 = vadd.f32 %v642_v39, %v543_v38  ;;  %908 = vst [vmem:[%s892_s24 + $0x8] sm:$0xff] (%p1171_p4), %v907_v49 }
 0x1c2   : > { %v644_v41 = vpop.f32.mrf.mxu1  ;;  %v909_v50 = vld [vmem:[%s1289_s15 + $0x10] sm:$0xff] (%p1171_p4) }
 0x1c3   : > { %653 = vst [vmem:[%s1289_s15 + $0x30] sm:$0xff] %v643_v40  ;;  %v645_v42 = vadd.f32 %v644_v41, %v543_v38  ;;  %910 = vst [vmem:[%s892_s24 + $0x20] sm:$0xff] (%p1171_p4), %v909_v50 }
 0x1c4   : > { %v868_v43 = vpop.f32.mrf.mxu1  ;;  %v911_v51 = vld [vmem:[%s1289_s15 + $0x18] sm:$0xff] (%p1171_p4) }
 0x1c5   : > { %654 = vst [vmem:[%s1289_s15 + $0x38] sm:$0xff] %v645_v42  ;;  %v869_v45 = vadd.f32 %v868_v43, %v797_v23  ;;  %912 = vst [vmem:[%s892_s24 + $0x28] sm:$0xff] (%p1171_p4), %v911_v51 }
 0x1c6   : > { %v870_v44 = vpop.f32.mrf.mxu1  ;;  %v913_v52 = vld [vmem:[%s1289_s15 + $0x20] sm:$0xff] (%p1171_p4) }
 0x1c7   : > { %v871_v46 = vadd.f32 %v870_v44, %v797_v23  ;;  %889 = sbr.rel (!%p1171_p4) target bundleno = 462 (0x1ce), region = 60  ;;  %914 = vst [vmem:[%s892_s24 + $0x40] sm:$0xff] (%p1171_p4), %v913_v52 }
 0x1c8   : > { %v915_v53 = vld [vmem:[%s1289_s15 + $0x28] sm:$0xff] (%p1171_p4) }
 0x1c9   : > { %v875_v47 = vcombine.low %v869_v45, %v871_v46  ;;  %916 = vst [vmem:[%s892_s24 + $0x48] sm:$0xff] (%p1171_p4), %v915_v53 }
 0x1ca   : > { %v917_v54 = vld [vmem:[%s1289_s15 + $0x30] sm:$0xff] (%p1171_p4) }
 0x1cb   : > { %877 = vst [vmem:[%s369_s19] sm:$0xff] %v875_v47  ;;  %918 = vst [vmem:[%s892_s24 + $0x60] sm:$0xff] (%p1171_p4), %v917_v54 }
 0x1cc   : > { %v919_v55 = vld [vmem:[%s1289_s15 + $0x38] sm:$0xff] }
 0x1cd   : > { %920 = vst [vmem:[%s892_s24 + $0x68] sm:$0xff] %v919_v55 }
 0x1ce PF: > { %p18_p8 = scmp.ge.s32.totalorder %s1161_s17, 4   ;;  %s1340_s13 = smov %s1083_s14 }
 0x1cf   : > { %s1341_s14 = smov %s1169_s20  ;;  %s1342_s15 = smov %s1161_s17 }
 0x1d0   :  { %20 = sbr.rel (!%p18_p8) target bundleno = 2 (0x2), region = 121 }

</bundles_post_ra>
